<compile_context>
chip_gen: v5e
topology: v5e:2x2
jax: 0.10.0
libtpu: 0.0.40
codegen_flags: <defaults>
</compile_context>

<pallas_src>
import jax
import jax.numpy as jnp
import numpy as np
from jax import lax
from jax.experimental import pallas as pl
from jax.experimental.pallas import tpu as pltpu

# --- problem sizes (small, consistent with the module's forward) ---
B = 2              # batch
BP = 8             # batch padded to one full sublane group
C_IN = 4           # conv in channels
L = 16             # input sequence length
C_OUT = 8          # conv out channels == LSTM input_size
K = 3              # conv kernel size (valid conv, stride 1)
L_OUT = L - K + 1  # 14 timesteps seen by the LSTM
H = 32             # LSTM hidden_size == clf_input_size
NUM_CLASSES = 3
G = 4 * H          # gate width (128 lanes)
NCLS_PAD = 128     # lane-dense padded classifier width


def crnn_kernel(xl_ref, wcat_ref, bfused_ref, whh_ref, wclf_ref, bclf_ref,
                out_ref, gx_ref):
    """Single invocation (no grid), whole problem in VMEM.

    xl_ref     : (L*BP, C_IN)     time-major, batch-padded input; row = l*BP + b
    wcat_ref   : (K, C_IN, 4H)    conv ⊗ W_ih fused weights (per conv tap k)
    bfused_ref : (1, 4H)          bconv @ W_ih^T + b_ih + b_hh
    whh_ref    : (H, 4H)          LSTM recurrent weights, pre-transposed
    wclf_ref   : (H, 128)         classifier weights * (1/L_OUT), padded to 128 lanes
    bclf_ref   : (1, 128)         classifier bias, zero-padded
    out_ref    : (BP, 128)        padded logits (rows >= B / cols >= NUM_CLASSES junk/zero)
    gx_ref     : (L_OUT*BP, 4H)   VMEM scratch: fused input-side gate pre-activations
    """
    # --- fused Conv1d + LSTM input projection for ALL (t, b): the k-th conv tap
    #     is an 8-sublane-aligned window of xl (rows k*BP .. k*BP + L_OUT*BP). ---
    acc = jnp.zeros((L_OUT * BP, G), jnp.float32)
    for k in range(K):
        acc = acc + jnp.dot(xl_ref[k * BP:k * BP + L_OUT * BP, :],
                            wcat_ref[k],
                            preferred_element_type=jnp.float32)
    gx_ref[...] = acc + bfused_ref[...]                 # (L_OUT*BP, 4H) staged in VMEM

    whh = whh_ref[...]                                  # (H, 4H)
    h = jnp.zeros((BP, H), jnp.float32)
    c = jnp.zeros((BP, H), jnp.float32)
    hsum = jnp.zeros((BP, H), jnp.float32)

    # --- fully unrolled LSTM recurrence (L_OUT = 14 static steps); per-step gx
    #     slice is a full (8,128) sublane-aligned tile loaded from scratch. ---
    for t in range(L_OUT):
        gates = (gx_ref[t * BP:(t + 1) * BP, :]
                 + jnp.dot(h, whh, preferred_element_type=jnp.float32))   # (BP,4H)
        sig = jax.nn.sigmoid(gates)                     # one full-width EUP pass
        th = jnp.tanh(gates)                            # one full-width EUP pass
        i_g = sig[:, 0:H]                               # quadrant 0: offset-free
        f_g = sig[:, H:2 * H]                           # f/g/o extracts depend only on
        g_g = th[:, 2 * H:3 * H]                        # sig/th -> parallel XLU issues
        o_g = sig[:, 3 * H:4 * H]
        c = f_g * c + i_g * g_g
        h = o_g * jnp.tanh(c)
        hsum = hsum + h

    # --- AdaptiveAvgPool1d(1) (scale folded into wclf) + Linear classifier ---
    out_ref[...] = (jnp.dot(hsum, wclf_ref[...],
                            preferred_element_type=jnp.float32)
                    + bclf_ref[...])                    # (BP, 128) unmasked store


def prepare_params(params):
    """One-time weight constant-folding (NOT on the per-call path)."""
    wconv, bconv, w_ih, w_hh, b_ih, b_hh, wclf, bclf = params
    wih_t = w_ih.T                                               # (C_OUT, 4H)
    # conv folded into the LSTM input projection (exact: conv output feeds LSTM linearly)
    wcat = jnp.einsum('ock,og->kcg', wconv, wih_t)               # (K, C_IN, 4H)
    bfused = (bconv @ wih_t + b_ih + b_hh).reshape(1, G)
    whh_t = w_hh.T                                               # (H, 4H)
    # classifier padded to 128 lanes; AdaptiveAvgPool1d(1) scale folded in
    wclf_pad = jnp.zeros((H, NCLS_PAD), jnp.float32).at[:, :NUM_CLASSES].set(
        wclf.T * (1.0 / L_OUT))
    bclf_pad = jnp.zeros((1, NCLS_PAD), jnp.float32).at[0, :NUM_CLASSES].set(bclf)
    prep = (wcat, bfused, whh_t, wclf_pad, bclf_pad)
    return jax.tree_util.tree_map(jnp.asarray, prep)


def crnn_avgpool_forward(x_ncl, prep):
    """x_ncl: (B, C_IN, L) float32 (PyTorch NCL). Returns (B, NUM_CLASSES)."""
    wcat, bfused, whh_t, wclf_pad, bclf_pad = prep

    # Only per-call layout plumbing: time-major transpose + batch pad to 8
    # (the trailing reshape is a free row-major merge).  Row = l*BP + b.
    x_lbc = jnp.transpose(x_ncl, (2, 0, 1))                      # (L, B, C_IN)
    xl = jnp.pad(x_lbc, ((0, 0), (0, BP - B), (0, 0))).reshape(L * BP, C_IN)

    vmem = pl.BlockSpec(memory_space=pltpu.MemorySpace.VMEM)
    out = pl.pallas_call(
        crnn_kernel,
        out_shape=jax.ShapeDtypeStruct((BP, NCLS_PAD), jnp.float32),
        in_specs=[vmem] * 6,
        out_specs=vmem,
        scratch_shapes=[pltpu.VMEM((L_OUT * BP, G), jnp.float32)],
    )(xl, wcat, bfused, whh_t, wclf_pad, bclf_pad)
    return out[:B, :NUM_CLASSES]


forward_jit = jax.jit(crnn_avgpool_forward)


def reference_forward(x_ncl, params):
    """Pure-JAX reference mirroring PyTorch semantics (for a sanity check)."""
    (wconv, bconv, w_ih, w_hh, b_ih, b_hh, wclf, bclf) = params
    cols = jnp.stack([x_ncl[:, :, k:k + L_OUT] for k in range(K)], axis=-1)
    feat = jnp.einsum('bclk,ock->bol', cols, wconv) + bconv[None, :, None]
    seq = jnp.transpose(feat, (0, 2, 1))                         # (B, L_OUT, C_OUT)

    def cell(carry, x_t):
        h, c = carry
        gates = x_t @ w_ih.T + h @ w_hh.T + b_ih + b_hh
        i = jax.nn.sigmoid(gates[:, :H])
        f = jax.nn.sigmoid(gates[:, H:2 * H])
        g = jnp.tanh(gates[:, 2 * H:3 * H])
        o = jax.nn.sigmoid(gates[:, 3 * H:])
        c = f * c + i * g
        h = o * jnp.tanh(c)
        return (h, c), h

    h0 = jnp.zeros((B, H), jnp.float32)
    c0 = jnp.zeros((B, H), jnp.float32)
    _, hs = lax.scan(cell, (h0, c0), jnp.transpose(seq, (1, 0, 2)))
    pooled = hs.mean(axis=0)                                     # AdaptiveAvgPool1d(1)
    return pooled @ wclf.T + bclf


def init_params(key):
    ks = jax.random.split(key, 8)
    s = 0.1
    wconv = s * jax.random.normal(ks[0], (C_OUT, C_IN, K), jnp.float32)
    bconv = s * jax.random.normal(ks[1], (C_OUT,), jnp.float32)
    w_ih = s * jax.random.normal(ks[2], (4 * H, C_OUT), jnp.float32)
    w_hh = s * jax.random.normal(ks[3], (4 * H, H), jnp.float32)
    b_ih = s * jax.random.normal(ks[4], (4 * H,), jnp.float32)
    b_hh = s * jax.random.normal(ks[5], (4 * H,), jnp.float32)
    wclf = s * jax.random.normal(ks[6], (NUM_CLASSES, H), jnp.float32)
    bclf = s * jax.random.normal(ks[7], (NUM_CLASSES,), jnp.float32)
    return (wconv, bconv, w_ih, w_hh, b_ih, b_hh, wclf, bclf)


if __name__ == "__main__":
    key = jax.random.PRNGKey(0)
    kx, kp = jax.random.split(key)
    x = jax.random.normal(kx, (B, C_IN, L), jnp.float32)         # NCL, like torch
    params = init_params(kp)

    # one-time weight folding (off the per-call path)
    prep = jax.block_until_ready(prepare_params(params))

    out = forward_jit(x, prep)
    out = jax.block_until_ready(out)

    ref = jax.block_until_ready(reference_forward(x, params))
    np.testing.assert_allclose(np.asarray(out), np.asarray(ref),
                               rtol=1e-4, atol=1e-4)
    print("KERNEL_OK")
</pallas_src>

<mosaic_0001>
module attributes {stable_mosaic.version = 11 : i64} {
  func.func @crnn_kernel(%arg0: memref<128x4xf32, #tpu.memory_space<vmem>>, %arg1: memref<3x4x128xf32, #tpu.memory_space<vmem>>, %arg2: memref<1x128xf32, #tpu.memory_space<vmem>>, %arg3: memref<32x128xf32, #tpu.memory_space<vmem>>, %arg4: memref<32x128xf32, #tpu.memory_space<vmem>>, %arg5: memref<1x128xf32, #tpu.memory_space<vmem>>, %arg6: memref<8x128xf32, #tpu.memory_space<vmem>>, %arg7: memref<112x128xf32, #tpu.memory_space<vmem>>) attributes {dimension_semantics = [], scalar_prefetch = 0 : i64, scratch_operands = 1 : i64, tpu.core_type = #tpu.core_type<tc>} {
    %cst = arith.constant 0.000000e+00 : f32
    %0 = vector.broadcast %cst : f32 to vector<112x128xf32>
    %c0 = arith.constant 0 : index
    %c0_0 = arith.constant 0 : index
    %1 = vector.load %arg0[%c0, %c0_0] : memref<128x4xf32, #tpu.memory_space<vmem>>, vector<112x4xf32>
    %c0_1 = arith.constant 0 : index
    %c0_2 = arith.constant 0 : index
    %c0_3 = arith.constant 0 : index
    %2 = vector.load %arg1[%c0_1, %c0_2, %c0_3] : memref<3x4x128xf32, #tpu.memory_space<vmem>>, vector<1x4x128xf32>
    %3 = vector.shape_cast %2 : vector<1x4x128xf32> to vector<4x128xf32>
    %cst_4 = arith.constant dense<0.000000e+00> : vector<112x128xf32>
    %4 = tpu.matmul %1, %3, %cst_4 {dimension_numbers = #tpu.dot_dimension_numbers<[1], [0], [0], [1], [0, 0, 1, 1], [], []>} : vector<112x4xf32>, vector<4x128xf32>, vector<112x128xf32> -> vector<112x128xf32>
    %5 = arith.addf %0, %4 : vector<112x128xf32>
    %c8 = arith.constant 8 : index
    %c0_5 = arith.constant 0 : index
    %6 = vector.load %arg0[%c8, %c0_5] : memref<128x4xf32, #tpu.memory_space<vmem>>, vector<112x4xf32>
    %c1 = arith.constant 1 : index
    %c0_6 = arith.constant 0 : index
    %c0_7 = arith.constant 0 : index
    %7 = vector.load %arg1[%c1, %c0_6, %c0_7] : memref<3x4x128xf32, #tpu.memory_space<vmem>>, vector<1x4x128xf32>
    %8 = vector.shape_cast %7 : vector<1x4x128xf32> to vector<4x128xf32>
    %cst_8 = arith.constant dense<0.000000e+00> : vector<112x128xf32>
    %9 = tpu.matmul %6, %8, %cst_8 {dimension_numbers = #tpu.dot_dimension_numbers<[1], [0], [0], [1], [0, 0, 1, 1], [], []>} : vector<112x4xf32>, vector<4x128xf32>, vector<112x128xf32> -> vector<112x128xf32>
    %10 = arith.addf %5, %9 : vector<112x128xf32>
    %c16 = arith.constant 16 : index
    %c0_9 = arith.constant 0 : index
    %11 = vector.load %arg0[%c16, %c0_9] : memref<128x4xf32, #tpu.memory_space<vmem>>, vector<112x4xf32>
    %c2 = arith.constant 2 : index
    %c0_10 = arith.constant 0 : index
    %c0_11 = arith.constant 0 : index
    %12 = vector.load %arg1[%c2, %c0_10, %c0_11] : memref<3x4x128xf32, #tpu.memory_space<vmem>>, vector<1x4x128xf32>
    %13 = vector.shape_cast %12 : vector<1x4x128xf32> to vector<4x128xf32>
    %cst_12 = arith.constant dense<0.000000e+00> : vector<112x128xf32>
    %14 = tpu.matmul %11, %13, %cst_12 {dimension_numbers = #tpu.dot_dimension_numbers<[1], [0], [0], [1], [0, 0, 1, 1], [], []>} : vector<112x4xf32>, vector<4x128xf32>, vector<112x128xf32> -> vector<112x128xf32>
    %15 = arith.addf %10, %14 : vector<112x128xf32>
    %c0_13 = arith.constant 0 : index
    %c0_14 = arith.constant 0 : index
    %16 = vector.load %arg2[%c0_13, %c0_14] : memref<1x128xf32, #tpu.memory_space<vmem>>, vector<1x128xf32>
    %17 = vector.broadcast %16 : vector<1x128xf32> to vector<112x128xf32>
    %18 = arith.addf %15, %17 : vector<112x128xf32>
    %c0_15 = arith.constant 0 : index
    %c0_16 = arith.constant 0 : index
    %19 = vector.load %arg7[%c0_15, %c0_16] : memref<112x128xf32, #tpu.memory_space<vmem>>, vector<112x128xf32>
    tpu.vector_store %arg7[%c0_15, %c0_16], %18 {strides = array<i32>} : memref<112x128xf32, #tpu.memory_space<vmem>>, vector<112x128xf32>,
    %c0_17 = arith.constant 0 : index
    %c0_18 = arith.constant 0 : index
    %20 = vector.load %arg3[%c0_17, %c0_18] : memref<32x128xf32, #tpu.memory_space<vmem>>, vector<32x128xf32>
    %cst_19 = arith.constant 0.000000e+00 : f32
    %21 = vector.broadcast %cst_19 : f32 to vector<8x32xf32>
    %cst_20 = arith.constant 0.000000e+00 : f32
    %22 = vector.broadcast %cst_20 : f32 to vector<8x32xf32>
    %cst_21 = arith.constant 0.000000e+00 : f32
    %23 = vector.broadcast %cst_21 : f32 to vector<8x32xf32>
    %c0_22 = arith.constant 0 : index
    %c0_23 = arith.constant 0 : index
    %24 = vector.load %arg7[%c0_22, %c0_23] : memref<112x128xf32, #tpu.memory_space<vmem>>, vector<8x128xf32>
    %cst_24 = arith.constant dense<0.000000e+00> : vector<8x128xf32>
    %25 = tpu.matmul %21, %20, %cst_24 {dimension_numbers = #tpu.dot_dimension_numbers<[1], [0], [0], [1], [0, 0, 1, 1], [], []>} : vector<8x32xf32>, vector<32x128xf32>, vector<8x128xf32> -> vector<8x128xf32>
    %26 = arith.addf %24, %25 : vector<8x128xf32>
    %27 = arith.negf %26 : vector<8x128xf32>
    %28 = math.exp %27 : vector<8x128xf32>
    %cst_25 = arith.constant 1.000000e+00 : f32
    %29 = vector.broadcast %cst_25 : f32 to vector<8x128xf32>
    %30 = arith.addf %29, %28 : vector<8x128xf32>
    %31 = arith.divf %29, %30 : vector<8x128xf32>
    %32 = math.tanh %26 : vector<8x128xf32>
    %33 = vector.extract_strided_slice %31 {offsets = [0, 0], sizes = [8, 32], strides = [1, 1]} : vector<8x128xf32> to vector<8x32xf32>
    %34 = vector.extract_strided_slice %31 {offsets = [0, 32], sizes = [8, 32], strides = [1, 1]} : vector<8x128xf32> to vector<8x32xf32>
    %35 = vector.extract_strided_slice %32 {offsets = [0, 64], sizes = [8, 32], strides = [1, 1]} : vector<8x128xf32> to vector<8x32xf32>
    %36 = vector.extract_strided_slice %31 {offsets = [0, 96], sizes = [8, 32], strides = [1, 1]} : vector<8x128xf32> to vector<8x32xf32>
    %37 = arith.mulf %34, %22 : vector<8x32xf32>
    %38 = arith.mulf %33, %35 : vector<8x32xf32>
    %39 = arith.addf %37, %38 : vector<8x32xf32>
    %40 = math.tanh %39 : vector<8x32xf32>
    %41 = arith.mulf %36, %40 : vector<8x32xf32>
    %42 = arith.addf %23, %41 : vector<8x32xf32>
    %c8_26 = arith.constant 8 : index
    %c0_27 = arith.constant 0 : index
    %43 = vector.load %arg7[%c8_26, %c0_27] : memref<112x128xf32, #tpu.memory_space<vmem>>, vector<8x128xf32>
    %cst_28 = arith.constant dense<0.000000e+00> : vector<8x128xf32>
    %44 = tpu.matmul %41, %20, %cst_28 {dimension_numbers = #tpu.dot_dimension_numbers<[1], [0], [0], [1], [0, 0, 1, 1], [], []>} : vector<8x32xf32>, vector<32x128xf32>, vector<8x128xf32> -> vector<8x128xf32>
    %45 = arith.addf %43, %44 : vector<8x128xf32>
    %46 = arith.negf %45 : vector<8x128xf32>
    %47 = math.exp %46 : vector<8x128xf32>
    %cst_29 = arith.constant 1.000000e+00 : f32
    %48 = vector.broadcast %cst_29 : f32 to vector<8x128xf32>
    %49 = arith.addf %48, %47 : vector<8x128xf32>
    %50 = arith.divf %48, %49 : vector<8x128xf32>
    %51 = math.tanh %45 : vector<8x128xf32>
    %52 = vector.extract_strided_slice %50 {offsets = [0, 0], sizes = [8, 32], strides = [1, 1]} : vector<8x128xf32> to vector<8x32xf32>
    %53 = vector.extract_strided_slice %50 {offsets = [0, 32], sizes = [8, 32], strides = [1, 1]} : vector<8x128xf32> to vector<8x32xf32>
    %54 = vector.extract_strided_slice %51 {offsets = [0, 64], sizes = [8, 32], strides = [1, 1]} : vector<8x128xf32> to vector<8x32xf32>
    %55 = vector.extract_strided_slice %50 {offsets = [0, 96], sizes = [8, 32], strides = [1, 1]} : vector<8x128xf32> to vector<8x32xf32>
    %56 = arith.mulf %53, %39 : vector<8x32xf32>
    %57 = arith.mulf %52, %54 : vector<8x32xf32>
    %58 = arith.addf %56, %57 : vector<8x32xf32>
    %59 = math.tanh %58 : vector<8x32xf32>
    %60 = arith.mulf %55, %59 : vector<8x32xf32>
    %61 = arith.addf %42, %60 : vector<8x32xf32>
    %c16_30 = arith.constant 16 : index
    %c0_31 = arith.constant 0 : index
    %62 = vector.load %arg7[%c16_30, %c0_31] : memref<112x128xf32, #tpu.memory_space<vmem>>, vector<8x128xf32>
    %cst_32 = arith.constant dense<0.000000e+00> : vector<8x128xf32>
    %63 = tpu.matmul %60, %20, %cst_32 {dimension_numbers = #tpu.dot_dimension_numbers<[1], [0], [0], [1], [0, 0, 1, 1], [], []>} : vector<8x32xf32>, vector<32x128xf32>, vector<8x128xf32> -> vector<8x128xf32>
    %64 = arith.addf %62, %63 : vector<8x128xf32>
    %65 = arith.negf %64 : vector<8x128xf32>
    %66 = math.exp %65 : vector<8x128xf32>
    %cst_33 = arith.constant 1.000000e+00 : f32
    %67 = vector.broadcast %cst_33 : f32 to vector<8x128xf32>
    %68 = arith.addf %67, %66 : vector<8x128xf32>
    %69 = arith.divf %67, %68 : vector<8x128xf32>
    %70 = math.tanh %64 : vector<8x128xf32>
    %71 = vector.extract_strided_slice %69 {offsets = [0, 0], sizes = [8, 32], strides = [1, 1]} : vector<8x128xf32> to vector<8x32xf32>
    %72 = vector.extract_strided_slice %69 {offsets = [0, 32], sizes = [8, 32], strides = [1, 1]} : vector<8x128xf32> to vector<8x32xf32>
    %73 = vector.extract_strided_slice %70 {offsets = [0, 64], sizes = [8, 32], strides = [1, 1]} : vector<8x128xf32> to vector<8x32xf32>
    %74 = vector.extract_strided_slice %69 {offsets = [0, 96], sizes = [8, 32], strides = [1, 1]} : vector<8x128xf32> to vector<8x32xf32>
    %75 = arith.mulf %72, %58 : vector<8x32xf32>
    %76 = arith.mulf %71, %73 : vector<8x32xf32>
    %77 = arith.addf %75, %76 : vector<8x32xf32>
    %78 = math.tanh %77 : vector<8x32xf32>
    %79 = arith.mulf %74, %78 : vector<8x32xf32>
    %80 = arith.addf %61, %79 : vector<8x32xf32>
    %c24 = arith.constant 24 : index
    %c0_34 = arith.constant 0 : index
    %81 = vector.load %arg7[%c24, %c0_34] : memref<112x128xf32, #tpu.memory_space<vmem>>, vector<8x128xf32>
    %cst_35 = arith.constant dense<0.000000e+00> : vector<8x128xf32>
    %82 = tpu.matmul %79, %20, %cst_35 {dimension_numbers = #tpu.dot_dimension_numbers<[1], [0], [0], [1], [0, 0, 1, 1], [], []>} : vector<8x32xf32>, vector<32x128xf32>, vector<8x128xf32> -> vector<8x128xf32>
    %83 = arith.addf %81, %82 : vector<8x128xf32>
    %84 = arith.negf %83 : vector<8x128xf32>
    %85 = math.exp %84 : vector<8x128xf32>
    %cst_36 = arith.constant 1.000000e+00 : f32
    %86 = vector.broadcast %cst_36 : f32 to vector<8x128xf32>
    %87 = arith.addf %86, %85 : vector<8x128xf32>
    %88 = arith.divf %86, %87 : vector<8x128xf32>
    %89 = math.tanh %83 : vector<8x128xf32>
    %90 = vector.extract_strided_slice %88 {offsets = [0, 0], sizes = [8, 32], strides = [1, 1]} : vector<8x128xf32> to vector<8x32xf32>
    %91 = vector.extract_strided_slice %88 {offsets = [0, 32], sizes = [8, 32], strides = [1, 1]} : vector<8x128xf32> to vector<8x32xf32>
    %92 = vector.extract_strided_slice %89 {offsets = [0, 64], sizes = [8, 32], strides = [1, 1]} : vector<8x128xf32> to vector<8x32xf32>
    %93 = vector.extract_strided_slice %88 {offsets = [0, 96], sizes = [8, 32], strides = [1, 1]} : vector<8x128xf32> to vector<8x32xf32>
    %94 = arith.mulf %91, %77 : vector<8x32xf32>
    %95 = arith.mulf %90, %92 : vector<8x32xf32>
    %96 = arith.addf %94, %95 : vector<8x32xf32>
    %97 = math.tanh %96 : vector<8x32xf32>
    %98 = arith.mulf %93, %97 : vector<8x32xf32>
    %99 = arith.addf %80, %98 : vector<8x32xf32>
    %c32 = arith.constant 32 : index
    %c0_37 = arith.constant 0 : index
    %100 = vector.load %arg7[%c32, %c0_37] : memref<112x128xf32, #tpu.memory_space<vmem>>, vector<8x128xf32>
    %cst_38 = arith.constant dense<0.000000e+00> : vector<8x128xf32>
    %101 = tpu.matmul %98, %20, %cst_38 {dimension_numbers = #tpu.dot_dimension_numbers<[1], [0], [0], [1], [0, 0, 1, 1], [], []>} : vector<8x32xf32>, vector<32x128xf32>, vector<8x128xf32> -> vector<8x128xf32>
    %102 = arith.addf %100, %101 : vector<8x128xf32>
    %103 = arith.negf %102 : vector<8x128xf32>
    %104 = math.exp %103 : vector<8x128xf32>
    %cst_39 = arith.constant 1.000000e+00 : f32
    %105 = vector.broadcast %cst_39 : f32 to vector<8x128xf32>
    %106 = arith.addf %105, %104 : vector<8x128xf32>
    %107 = arith.divf %105, %106 : vector<8x128xf32>
    %108 = math.tanh %102 : vector<8x128xf32>
    %109 = vector.extract_strided_slice %107 {offsets = [0, 0], sizes = [8, 32], strides = [1, 1]} : vector<8x128xf32> to vector<8x32xf32>
    %110 = vector.extract_strided_slice %107 {offsets = [0, 32], sizes = [8, 32], strides = [1, 1]} : vector<8x128xf32> to vector<8x32xf32>
    %111 = vector.extract_strided_slice %108 {offsets = [0, 64], sizes = [8, 32], strides = [1, 1]} : vector<8x128xf32> to vector<8x32xf32>
    %112 = vector.extract_strided_slice %107 {offsets = [0, 96], sizes = [8, 32], strides = [1, 1]} : vector<8x128xf32> to vector<8x32xf32>
    %113 = arith.mulf %110, %96 : vector<8x32xf32>
    %114 = arith.mulf %109, %111 : vector<8x32xf32>
    %115 = arith.addf %113, %114 : vector<8x32xf32>
    %116 = math.tanh %115 : vector<8x32xf32>
    %117 = arith.mulf %112, %116 : vector<8x32xf32>
    %118 = arith.addf %99, %117 : vector<8x32xf32>
    %c40 = arith.constant 40 : index
    %c0_40 = arith.constant 0 : index
    %119 = vector.load %arg7[%c40, %c0_40] : memref<112x128xf32, #tpu.memory_space<vmem>>, vector<8x128xf32>
    %cst_41 = arith.constant dense<0.000000e+00> : vector<8x128xf32>
    %120 = tpu.matmul %117, %20, %cst_41 {dimension_numbers = #tpu.dot_dimension_numbers<[1], [0], [0], [1], [0, 0, 1, 1], [], []>} : vector<8x32xf32>, vector<32x128xf32>, vector<8x128xf32> -> vector<8x128xf32>
    %121 = arith.addf %119, %120 : vector<8x128xf32>
    %122 = arith.negf %121 : vector<8x128xf32>
    %123 = math.exp %122 : vector<8x128xf32>
    %cst_42 = arith.constant 1.000000e+00 : f32
    %124 = vector.broadcast %cst_42 : f32 to vector<8x128xf32>
    %125 = arith.addf %124, %123 : vector<8x128xf32>
    %126 = arith.divf %124, %125 : vector<8x128xf32>
    %127 = math.tanh %121 : vector<8x128xf32>
    %128 = vector.extract_strided_slice %126 {offsets = [0, 0], sizes = [8, 32], strides = [1, 1]} : vector<8x128xf32> to vector<8x32xf32>
    %129 = vector.extract_strided_slice %126 {offsets = [0, 32], sizes = [8, 32], strides = [1, 1]} : vector<8x128xf32> to vector<8x32xf32>
    %130 = vector.extract_strided_slice %127 {offsets = [0, 64], sizes = [8, 32], strides = [1, 1]} : vector<8x128xf32> to vector<8x32xf32>
    %131 = vector.extract_strided_slice %126 {offsets = [0, 96], sizes = [8, 32], strides = [1, 1]} : vector<8x128xf32> to vector<8x32xf32>
    %132 = arith.mulf %129, %115 : vector<8x32xf32>
    %133 = arith.mulf %128, %130 : vector<8x32xf32>
    %134 = arith.addf %132, %133 : vector<8x32xf32>
    %135 = math.tanh %134 : vector<8x32xf32>
    %136 = arith.mulf %131, %135 : vector<8x32xf32>
    %137 = arith.addf %118, %136 : vector<8x32xf32>
    %c48 = arith.constant 48 : index
    %c0_43 = arith.constant 0 : index
    %138 = vector.load %arg7[%c48, %c0_43] : memref<112x128xf32, #tpu.memory_space<vmem>>, vector<8x128xf32>
    %cst_44 = arith.constant dense<0.000000e+00> : vector<8x128xf32>
    %139 = tpu.matmul %136, %20, %cst_44 {dimension_numbers = #tpu.dot_dimension_numbers<[1], [0], [0], [1], [0, 0, 1, 1], [], []>} : vector<8x32xf32>, vector<32x128xf32>, vector<8x128xf32> -> vector<8x128xf32>
    %140 = arith.addf %138, %139 : vector<8x128xf32>
    %141 = arith.negf %140 : vector<8x128xf32>
    %142 = math.exp %141 : vector<8x128xf32>
    %cst_45 = arith.constant 1.000000e+00 : f32
    %143 = vector.broadcast %cst_45 : f32 to vector<8x128xf32>
    %144 = arith.addf %143, %142 : vector<8x128xf32>
    %145 = arith.divf %143, %144 : vector<8x128xf32>
    %146 = math.tanh %140 : vector<8x128xf32>
    %147 = vector.extract_strided_slice %145 {offsets = [0, 0], sizes = [8, 32], strides = [1, 1]} : vector<8x128xf32> to vector<8x32xf32>
    %148 = vector.extract_strided_slice %145 {offsets = [0, 32], sizes = [8, 32], strides = [1, 1]} : vector<8x128xf32> to vector<8x32xf32>
    %149 = vector.extract_strided_slice %146 {offsets = [0, 64], sizes = [8, 32], strides = [1, 1]} : vector<8x128xf32> to vector<8x32xf32>
    %150 = vector.extract_strided_slice %145 {offsets = [0, 96], sizes = [8, 32], strides = [1, 1]} : vector<8x128xf32> to vector<8x32xf32>
    %151 = arith.mulf %148, %134 : vector<8x32xf32>
    %152 = arith.mulf %147, %149 : vector<8x32xf32>
    %153 = arith.addf %151, %152 : vector<8x32xf32>
    %154 = math.tanh %153 : vector<8x32xf32>
    %155 = arith.mulf %150, %154 : vector<8x32xf32>
    %156 = arith.addf %137, %155 : vector<8x32xf32>
    %c56 = arith.constant 56 : index
    %c0_46 = arith.constant 0 : index
    %157 = vector.load %arg7[%c56, %c0_46] : memref<112x128xf32, #tpu.memory_space<vmem>>, vector<8x128xf32>
    %cst_47 = arith.constant dense<0.000000e+00> : vector<8x128xf32>
    %158 = tpu.matmul %155, %20, %cst_47 {dimension_numbers = #tpu.dot_dimension_numbers<[1], [0], [0], [1], [0, 0, 1, 1], [], []>} : vector<8x32xf32>, vector<32x128xf32>, vector<8x128xf32> -> vector<8x128xf32>
    %159 = arith.addf %157, %158 : vector<8x128xf32>
    %160 = arith.negf %159 : vector<8x128xf32>
    %161 = math.exp %160 : vector<8x128xf32>
    %cst_48 = arith.constant 1.000000e+00 : f32
    %162 = vector.broadcast %cst_48 : f32 to vector<8x128xf32>
    %163 = arith.addf %162, %161 : vector<8x128xf32>
    %164 = arith.divf %162, %163 : vector<8x128xf32>
    %165 = math.tanh %159 : vector<8x128xf32>
    %166 = vector.extract_strided_slice %164 {offsets = [0, 0], sizes = [8, 32], strides = [1, 1]} : vector<8x128xf32> to vector<8x32xf32>
    %167 = vector.extract_strided_slice %164 {offsets = [0, 32], sizes = [8, 32], strides = [1, 1]} : vector<8x128xf32> to vector<8x32xf32>
    %168 = vector.extract_strided_slice %165 {offsets = [0, 64], sizes = [8, 32], strides = [1, 1]} : vector<8x128xf32> to vector<8x32xf32>
    %169 = vector.extract_strided_slice %164 {offsets = [0, 96], sizes = [8, 32], strides = [1, 1]} : vector<8x128xf32> to vector<8x32xf32>
    %170 = arith.mulf %167, %153 : vector<8x32xf32>
    %171 = arith.mulf %166, %168 : vector<8x32xf32>
    %172 = arith.addf %170, %171 : vector<8x32xf32>
    %173 = math.tanh %172 : vector<8x32xf32>
    %174 = arith.mulf %169, %173 : vector<8x32xf32>
    %175 = arith.addf %156, %174 : vector<8x32xf32>
    %c64 = arith.constant 64 : index
    %c0_49 = arith.constant 0 : index
    %176 = vector.load %arg7[%c64, %c0_49] : memref<112x128xf32, #tpu.memory_space<vmem>>, vector<8x128xf32>
    %cst_50 = arith.constant dense<0.000000e+00> : vector<8x128xf32>
    %177 = tpu.matmul %174, %20, %cst_50 {dimension_numbers = #tpu.dot_dimension_numbers<[1], [0], [0], [1], [0, 0, 1, 1], [], []>} : vector<8x32xf32>, vector<32x128xf32>, vector<8x128xf32> -> vector<8x128xf32>
    %178 = arith.addf %176, %177 : vector<8x128xf32>
    %179 = arith.negf %178 : vector<8x128xf32>
    %180 = math.exp %179 : vector<8x128xf32>
    %cst_51 = arith.constant 1.000000e+00 : f32
    %181 = vector.broadcast %cst_51 : f32 to vector<8x128xf32>
    %182 = arith.addf %181, %180 : vector<8x128xf32>
    %183 = arith.divf %181, %182 : vector<8x128xf32>
    %184 = math.tanh %178 : vector<8x128xf32>
    %185 = vector.extract_strided_slice %183 {offsets = [0, 0], sizes = [8, 32], strides = [1, 1]} : vector<8x128xf32> to vector<8x32xf32>
    %186 = vector.extract_strided_slice %183 {offsets = [0, 32], sizes = [8, 32], strides = [1, 1]} : vector<8x128xf32> to vector<8x32xf32>
    %187 = vector.extract_strided_slice %184 {offsets = [0, 64], sizes = [8, 32], strides = [1, 1]} : vector<8x128xf32> to vector<8x32xf32>
    %188 = vector.extract_strided_slice %183 {offsets = [0, 96], sizes = [8, 32], strides = [1, 1]} : vector<8x128xf32> to vector<8x32xf32>
    %189 = arith.mulf %186, %172 : vector<8x32xf32>
    %190 = arith.mulf %185, %187 : vector<8x32xf32>
    %191 = arith.addf %189, %190 : vector<8x32xf32>
    %192 = math.tanh %191 : vector<8x32xf32>
    %193 = arith.mulf %188, %192 : vector<8x32xf32>
    %194 = arith.addf %175, %193 : vector<8x32xf32>
    %c72 = arith.constant 72 : index
    %c0_52 = arith.constant 0 : index
    %195 = vector.load %arg7[%c72, %c0_52] : memref<112x128xf32, #tpu.memory_space<vmem>>, vector<8x128xf32>
    %cst_53 = arith.constant dense<0.000000e+00> : vector<8x128xf32>
    %196 = tpu.matmul %193, %20, %cst_53 {dimension_numbers = #tpu.dot_dimension_numbers<[1], [0], [0], [1], [0, 0, 1, 1], [], []>} : vector<8x32xf32>, vector<32x128xf32>, vector<8x128xf32> -> vector<8x128xf32>
    %197 = arith.addf %195, %196 : vector<8x128xf32>
    %198 = arith.negf %197 : vector<8x128xf32>
    %199 = math.exp %198 : vector<8x128xf32>
    %cst_54 = arith.constant 1.000000e+00 : f32
    %200 = vector.broadcast %cst_54 : f32 to vector<8x128xf32>
    %201 = arith.addf %200, %199 : vector<8x128xf32>
    %202 = arith.divf %200, %201 : vector<8x128xf32>
    %203 = math.tanh %197 : vector<8x128xf32>
    %204 = vector.extract_strided_slice %202 {offsets = [0, 0], sizes = [8, 32], strides = [1, 1]} : vector<8x128xf32> to vector<8x32xf32>
    %205 = vector.extract_strided_slice %202 {offsets = [0, 32], sizes = [8, 32], strides = [1, 1]} : vector<8x128xf32> to vector<8x32xf32>
    %206 = vector.extract_strided_slice %203 {offsets = [0, 64], sizes = [8, 32], strides = [1, 1]} : vector<8x128xf32> to vector<8x32xf32>
    %207 = vector.extract_strided_slice %202 {offsets = [0, 96], sizes = [8, 32], strides = [1, 1]} : vector<8x128xf32> to vector<8x32xf32>
    %208 = arith.mulf %205, %191 : vector<8x32xf32>
    %209 = arith.mulf %204, %206 : vector<8x32xf32>
    %210 = arith.addf %208, %209 : vector<8x32xf32>
    %211 = math.tanh %210 : vector<8x32xf32>
    %212 = arith.mulf %207, %211 : vector<8x32xf32>
    %213 = arith.addf %194, %212 : vector<8x32xf32>
    %c80 = arith.constant 80 : index
    %c0_55 = arith.constant 0 : index
    %214 = vector.load %arg7[%c80, %c0_55] : memref<112x128xf32, #tpu.memory_space<vmem>>, vector<8x128xf32>
    %cst_56 = arith.constant dense<0.000000e+00> : vector<8x128xf32>
    %215 = tpu.matmul %212, %20, %cst_56 {dimension_numbers = #tpu.dot_dimension_numbers<[1], [0], [0], [1], [0, 0, 1, 1], [], []>} : vector<8x32xf32>, vector<32x128xf32>, vector<8x128xf32> -> vector<8x128xf32>
    %216 = arith.addf %214, %215 : vector<8x128xf32>
    %217 = arith.negf %216 : vector<8x128xf32>
    %218 = math.exp %217 : vector<8x128xf32>
    %cst_57 = arith.constant 1.000000e+00 : f32
    %219 = vector.broadcast %cst_57 : f32 to vector<8x128xf32>
    %220 = arith.addf %219, %218 : vector<8x128xf32>
    %221 = arith.divf %219, %220 : vector<8x128xf32>
    %222 = math.tanh %216 : vector<8x128xf32>
    %223 = vector.extract_strided_slice %221 {offsets = [0, 0], sizes = [8, 32], strides = [1, 1]} : vector<8x128xf32> to vector<8x32xf32>
    %224 = vector.extract_strided_slice %221 {offsets = [0, 32], sizes = [8, 32], strides = [1, 1]} : vector<8x128xf32> to vector<8x32xf32>
    %225 = vector.extract_strided_slice %222 {offsets = [0, 64], sizes = [8, 32], strides = [1, 1]} : vector<8x128xf32> to vector<8x32xf32>
    %226 = vector.extract_strided_slice %221 {offsets = [0, 96], sizes = [8, 32], strides = [1, 1]} : vector<8x128xf32> to vector<8x32xf32>
    %227 = arith.mulf %224, %210 : vector<8x32xf32>
    %228 = arith.mulf %223, %225 : vector<8x32xf32>
    %229 = arith.addf %227, %228 : vector<8x32xf32>
    %230 = math.tanh %229 : vector<8x32xf32>
    %231 = arith.mulf %226, %230 : vector<8x32xf32>
    %232 = arith.addf %213, %231 : vector<8x32xf32>
    %c88 = arith.constant 88 : index
    %c0_58 = arith.constant 0 : index
    %233 = vector.load %arg7[%c88, %c0_58] : memref<112x128xf32, #tpu.memory_space<vmem>>, vector<8x128xf32>
    %cst_59 = arith.constant dense<0.000000e+00> : vector<8x128xf32>
    %234 = tpu.matmul %231, %20, %cst_59 {dimension_numbers = #tpu.dot_dimension_numbers<[1], [0], [0], [1], [0, 0, 1, 1], [], []>} : vector<8x32xf32>, vector<32x128xf32>, vector<8x128xf32> -> vector<8x128xf32>
    %235 = arith.addf %233, %234 : vector<8x128xf32>
    %236 = arith.negf %235 : vector<8x128xf32>
    %237 = math.exp %236 : vector<8x128xf32>
    %cst_60 = arith.constant 1.000000e+00 : f32
    %238 = vector.broadcast %cst_60 : f32 to vector<8x128xf32>
    %239 = arith.addf %238, %237 : vector<8x128xf32>
    %240 = arith.divf %238, %239 : vector<8x128xf32>
    %241 = math.tanh %235 : vector<8x128xf32>
    %242 = vector.extract_strided_slice %240 {offsets = [0, 0], sizes = [8, 32], strides = [1, 1]} : vector<8x128xf32> to vector<8x32xf32>
    %243 = vector.extract_strided_slice %240 {offsets = [0, 32], sizes = [8, 32], strides = [1, 1]} : vector<8x128xf32> to vector<8x32xf32>
    %244 = vector.extract_strided_slice %241 {offsets = [0, 64], sizes = [8, 32], strides = [1, 1]} : vector<8x128xf32> to vector<8x32xf32>
    %245 = vector.extract_strided_slice %240 {offsets = [0, 96], sizes = [8, 32], strides = [1, 1]} : vector<8x128xf32> to vector<8x32xf32>
    %246 = arith.mulf %243, %229 : vector<8x32xf32>
    %247 = arith.mulf %242, %244 : vector<8x32xf32>
    %248 = arith.addf %246, %247 : vector<8x32xf32>
    %249 = math.tanh %248 : vector<8x32xf32>
    %250 = arith.mulf %245, %249 : vector<8x32xf32>
    %251 = arith.addf %232, %250 : vector<8x32xf32>
    %c96 = arith.constant 96 : index
    %c0_61 = arith.constant 0 : index
    %252 = vector.load %arg7[%c96, %c0_61] : memref<112x128xf32, #tpu.memory_space<vmem>>, vector<8x128xf32>
    %cst_62 = arith.constant dense<0.000000e+00> : vector<8x128xf32>
    %253 = tpu.matmul %250, %20, %cst_62 {dimension_numbers = #tpu.dot_dimension_numbers<[1], [0], [0], [1], [0, 0, 1, 1], [], []>} : vector<8x32xf32>, vector<32x128xf32>, vector<8x128xf32> -> vector<8x128xf32>
    %254 = arith.addf %252, %253 : vector<8x128xf32>
    %255 = arith.negf %254 : vector<8x128xf32>
    %256 = math.exp %255 : vector<8x128xf32>
    %cst_63 = arith.constant 1.000000e+00 : f32
    %257 = vector.broadcast %cst_63 : f32 to vector<8x128xf32>
    %258 = arith.addf %257, %256 : vector<8x128xf32>
    %259 = arith.divf %257, %258 : vector<8x128xf32>
    %260 = math.tanh %254 : vector<8x128xf32>
    %261 = vector.extract_strided_slice %259 {offsets = [0, 0], sizes = [8, 32], strides = [1, 1]} : vector<8x128xf32> to vector<8x32xf32>
    %262 = vector.extract_strided_slice %259 {offsets = [0, 32], sizes = [8, 32], strides = [1, 1]} : vector<8x128xf32> to vector<8x32xf32>
    %263 = vector.extract_strided_slice %260 {offsets = [0, 64], sizes = [8, 32], strides = [1, 1]} : vector<8x128xf32> to vector<8x32xf32>
    %264 = vector.extract_strided_slice %259 {offsets = [0, 96], sizes = [8, 32], strides = [1, 1]} : vector<8x128xf32> to vector<8x32xf32>
    %265 = arith.mulf %262, %248 : vector<8x32xf32>
    %266 = arith.mulf %261, %263 : vector<8x32xf32>
    %267 = arith.addf %265, %266 : vector<8x32xf32>
    %268 = math.tanh %267 : vector<8x32xf32>
    %269 = arith.mulf %264, %268 : vector<8x32xf32>
    %270 = arith.addf %251, %269 : vector<8x32xf32>
    %c104 = arith.constant 104 : index
    %c0_64 = arith.constant 0 : index
    %271 = vector.load %arg7[%c104, %c0_64] : memref<112x128xf32, #tpu.memory_space<vmem>>, vector<8x128xf32>
    %cst_65 = arith.constant dense<0.000000e+00> : vector<8x128xf32>
    %272 = tpu.matmul %269, %20, %cst_65 {dimension_numbers = #tpu.dot_dimension_numbers<[1], [0], [0], [1], [0, 0, 1, 1], [], []>} : vector<8x32xf32>, vector<32x128xf32>, vector<8x128xf32> -> vector<8x128xf32>
    %273 = arith.addf %271, %272 : vector<8x128xf32>
    %274 = arith.negf %273 : vector<8x128xf32>
    %275 = math.exp %274 : vector<8x128xf32>
    %cst_66 = arith.constant 1.000000e+00 : f32
    %276 = vector.broadcast %cst_66 : f32 to vector<8x128xf32>
    %277 = arith.addf %276, %275 : vector<8x128xf32>
    %278 = arith.divf %276, %277 : vector<8x128xf32>
    %279 = math.tanh %273 : vector<8x128xf32>
    %280 = vector.extract_strided_slice %278 {offsets = [0, 0], sizes = [8, 32], strides = [1, 1]} : vector<8x128xf32> to vector<8x32xf32>
    %281 = vector.extract_strided_slice %278 {offsets = [0, 32], sizes = [8, 32], strides = [1, 1]} : vector<8x128xf32> to vector<8x32xf32>
    %282 = vector.extract_strided_slice %279 {offsets = [0, 64], sizes = [8, 32], strides = [1, 1]} : vector<8x128xf32> to vector<8x32xf32>
    %283 = vector.extract_strided_slice %278 {offsets = [0, 96], sizes = [8, 32], strides = [1, 1]} : vector<8x128xf32> to vector<8x32xf32>
    %284 = arith.mulf %281, %267 : vector<8x32xf32>
    %285 = arith.mulf %280, %282 : vector<8x32xf32>
    %286 = arith.addf %284, %285 : vector<8x32xf32>
    %287 = math.tanh %286 : vector<8x32xf32>
    %288 = arith.mulf %283, %287 : vector<8x32xf32>
    %289 = arith.addf %270, %288 : vector<8x32xf32>
    %c0_67 = arith.constant 0 : index
    %c0_68 = arith.constant 0 : index
    %290 = vector.load %arg4[%c0_67, %c0_68] : memref<32x128xf32, #tpu.memory_space<vmem>>, vector<32x128xf32>
    %cst_69 = arith.constant dense<0.000000e+00> : vector<8x128xf32>
    %291 = tpu.matmul %289, %290, %cst_69 {dimension_numbers = #tpu.dot_dimension_numbers<[1], [0], [0], [1], [0, 0, 1, 1], [], []>} : vector<8x32xf32>, vector<32x128xf32>, vector<8x128xf32> -> vector<8x128xf32>
    %c0_70 = arith.constant 0 : index
    %c0_71 = arith.constant 0 : index
    %292 = vector.load %arg5[%c0_70, %c0_71] : memref<1x128xf32, #tpu.memory_space<vmem>>, vector<1x128xf32>
    %293 = vector.broadcast %292 : vector<1x128xf32> to vector<8x128xf32>
    %294 = arith.addf %291, %293 : vector<8x128xf32>
    %c0_72 = arith.constant 0 : index
    %c0_73 = arith.constant 0 : index
    %295 = vector.load %arg6[%c0_72, %c0_73] : memref<8x128xf32, #tpu.memory_space<vmem>>, vector<8x128xf32>
    tpu.vector_store %arg6[%c0_72, %c0_73], %294 {strides = array<i32>} : memref<8x128xf32, #tpu.memory_space<vmem>>, vector<8x128xf32>,
    return
  }
}

</mosaic_0001>

<bundles_post_ra>
// kernel: crnn_avgpool_forward.1
= control target key start
LH: loop header
LB: loop body
LE: loop exit
PB: predicated region body
PF: predicated region fallthrough
CT: control target
= control target key end

     0   :  { %vm84_vm0 = vcmask 1043456   ;;  %vm41_vm1 = vcmask 31744   ;;  %v1526_v10 = vmov 0.0   ;;  %s1527_s18 = smov 64   ;;  %s1528_s19 = smov 32   ;;  %vm383_vm6 = vcmask 261120   ;;  %s1862_s3 = inlined_call_operand.vmem [shape: f32[32,128], index: 3, kind: input, shape index: {}]   ;;  %s1863_s1 = inlined_call_operand.vmem [shape: f32[3,4,128], index: 1, kind: input, shape index: {}]   ;;  %s1864_s0 = inlined_call_operand.vmem [shape: f32[128,4], index: 0, kind: input, shape index: {}]   ;;  %s1865_s2 = inlined_call_operand.vmem [shape: f32[1,128], index: 2, kind: input, shape index: {}]   ;;  %s1866_s4 = inlined_call_operand.vmem [shape: f32[32,128], index: 4, kind: input, shape index: {}]   ;;  %s1867_s5 = inlined_call_operand.vmem [shape: f32[1,128], index: 5, kind: input, shape index: {}]   ;;  %s1868_s6 = inlined_call_operand.vmem [shape: f32[8,128], index: 6, kind: output, shape index: {}]  }
   0x1   :  { %v1567_v0 = vld [vmem:[%s1862_s3 + $0x18] sm:$0xff]  ;;  %v1360_v1 = vld [vmem:[%s1863_s1 + $0x8] sm:$0xf]  ;;  %v1575_v2 = vld [vmem:[%s1862_s3 + $0x10] sm:$0xff] }
   0x2   :  { %399 = vmatpush.msra.mxu3 %v1567_v0  ;;  %1361 = vmatpush.msk.msra.mxu2 %vm84_vm0, %v1360_v1  ;;  %v212_v3 = vld [vmem:[%s1864_s0 + $0x10] sm:$0xff]  ;;  %v1329_v4 = vld [vmem:[%s1863_s1 + $0x4] sm:$0xf]  ;;  %v1589_v5 = vld [vmem:[%s1862_s3 + $0x8] sm:$0xff] }
   0x3   :  { %1362 = vmatmul.msk.f32.vlgmr.msra.gmra.mxu2 %vm41_vm1, %v212_v3  ;;  %1330 = vmatpush.msk.msra.mxu0 %vm84_vm0, %v1329_v4  ;;  %v37_v6 = vld [vmem:[%s1863_s1] sm:$0xf]  ;;  %v24_v7 = vld [vmem:[%s1864_s0 + $0x8] sm:$0xff]  ;;  %v213_v40 = vld [vmem:[%s1864_s0 + $0x18] sm:$0xff] }
   0x4   :  { %400 = vmatpush.msra.mxu3 %v1575_v2  ;;  %1345 = vmatpush.msk.msra.mxu1 %vm84_vm0, %v37_v6  ;;  %v23_v8 = vld [vmem:[%s1864_s0] sm:$0xff] }
   0x5   :  { %v1606_v9 = vld [vmem:[%s1862_s3] sm:$0xff]  ;;  %1331 = vmatmul.msk.f32.vlgmr.msra.gmra.mxu0 %vm41_vm1, %v24_v7  ;;  %1346 = vmatmul.msk.f32.vlgmr.msra.gmra.mxu1 %vm41_vm1, %v23_v8 }
   0x6   :  { %401 = vmatpush.msra.mxu3 %v1589_v5  ;;  %v1626_v14 = vld [vmem:[%s1865_s2] ss:$0 sm:$0xff] }
   0x8   :  { %402 = vmatpush.msra.mxu3 %v1606_v9 }
   0x9   :  { %403 = vmatmul.f32.vlgmr.msra.gmra.mxu3 %v1526_v10 }
   0xa   :  { %464 = vmatpush.msrb.mxu3 %v1567_v0 }
   0xb   :  { %1363 = vmatmul.msk.f32.gmra.mxu2 %vm41_vm1, %v213_v40 }
   0xc   :  { %465 = vmatpush.msrb.mxu3 %v1575_v2 }
   0xd   :  { %1332 = vmatmul.msk.f32.gmra.mxu0 %vm41_vm1, %v212_v3  ;;  %1347 = vmatmul.msk.f32.gmra.mxu1 %vm41_vm1, %v24_v7 }
   0xe   :  { %466 = vmatpush.msrb.mxu3 %v1589_v5 }
  0x10   :  { %467 = vmatpush.msrb.mxu3 %v1606_v9 }
  0x12   :  { %529 = vmatpush.msra.mxu3 %v1567_v0 }
  0x14   :  { %530 = vmatpush.msra.mxu3 %v1575_v2 }
  0x15   :  { %1348 = vmatmul.msk.f32.gmra.mxu1 %vm41_vm1, %v212_v3  ;;  %1333 = vmatmul.msk.f32.gmra.mxu0 %vm41_vm1, %v213_v40 }
  0x16   :  { %531 = vmatpush.msra.mxu3 %v1589_v5 }
  0x18   :  { %532 = vmatpush.msra.mxu3 %v1606_v9 }
  0x1d   :  { %1349 = vmatmul.msk.f32.gmra.mxu1 %vm41_vm1, %v213_v40 }
  0x82   :  { %v105_v11 = vpop.f32.mrf.mxu0  ;;  %v170_v12 = vpop.f32.mrf.mxu1 }
  0x83   :  { %v171_v13 = vadd.f32 %v170_v12, %v105_v11  ;;  %v214_v12 = vld [vmem:[%s1864_s0 + $0x20] sm:$0xff] }
  0x84   :  { %1364 = vmatmul.msk.f32.gmra.mxu2 %vm41_vm1, %v214_v12  ;;  %1334 = vmatmul.msk.f32.gmra.mxu0 %vm41_vm1, %v214_v12 }
  0x85   :  { %1350 = vmatmul.msk.f32.gmra.mxu1 %vm41_vm1, %v214_v12 }
  0x86   :  { %v290_v15 = vpop.f32.mrf.mxu2 }
  0x87   :  { %v332_v16 = vadd.f32 %v290_v15, %v171_v13 }
  0x89   :  { %v350_v17 = vadd.f32 %v1626_v14, %v332_v16 }
  0x8a   :  { %v108_v44 = vpop.f32.mrf.mxu0  ;;  %v173_v45 = vpop.f32.mrf.mxu1 }
  0x8b   :  { %v174_v46 = vadd.f32 %v173_v45, %v108_v44 }
  0x8c   :  { %v404_v18 = vpop.f32.mrf.mxu3 }
  0x8d   :  { %v407_v19 = vadd.f32 %v404_v18, %v350_v17 }
  0x8e   :  { %v293_v47 = vpop.f32.mrf.mxu2 }
  0x8f   :  { %1409 = vtanh.f32 %v407_v19  ;;  %v1376_v21 = vmul.f32 -1.442695, %v407_v19  ;;  %v333_v48 = vadd.f32 %v293_v47, %v174_v46  ;;  %v215_v46 = vld [vmem:[%s1864_s0 + $0x28] sm:$0xff] }
  0x90   :  { %1365 = vmatmul.msk.f32.gmra.mxu2 %vm41_vm1, %v215_v46  ;;  %1335 = vmatmul.msk.f32.gmra.mxu0 %vm41_vm1, %v215_v46 }
  0x91   :  { %1411 = vpow2.f32 %v1376_v21  ;;  %v351_v49 = vadd.f32 %v1626_v14, %v333_v48  ;;  %1351 = vmatmul.msk.f32.gmra.mxu1 %vm41_vm1, %v215_v46 }
  0x92   :  { %v111_v17 = vpop.f32.mrf.mxu0  ;;  %v176_v18 = vpop.f32.mrf.mxu1 }
  0x93   :  { %v177_v19 = vadd.f32 %v176_v18, %v111_v17 }
  0x95   :  { %v1410_v20 = vpop.eup %1409 }
  0x96   :  { %430 = vrot.lane.b32.xlu0 %v1410_v20, %s1527_s18 }
  0x97   :  { %v1412_v22 = vpop.eup %1411 }
  0x98   :  { %v411_v23 = vadd.f32 1.0, %v1412_v22 }
  0x9a   :  { %1413 = vrcp.f32 %v411_v23  ;;  %v423_v29 = vand.u32 2147483648, %v411_v23  ;;  %vm417_vm3 = vweird.f32 %v411_v23  ;;  %v421_v30 = vand.u32 2147483647, %v411_v23 }
  0x9c   :  { %v424_v32 = vor.u32 1.1754944e-38, %v423_v29  ;;  %vm422_vm5 = vcmp.eq.f32.partialorder %v421_v30, 8.507059e+37 }
  0xa0   :  { %v1414_v24 = vpop.eup %1413 }
  0xa1   :  { %v413_v25 = vmul.f32 %v1414_v24, %v411_v23  ;;  %vm418_vm2 = vweird.f32 %v1414_v24 }
  0xa2   :  { %vm419_vm4 = vmor %vm417_vm3, %vm418_vm2 }
  0xa3   :  { %v414_v26 = vsub.f32 1.0, %v413_v25 }
  0xa5   :  { %v415_v27 = vmul.f32 %v1414_v24, %v414_v26 }
  0xa7   :  { %v416_v28 = vadd.f32 %v1414_v24, %v415_v27 }
  0xa9   :  { %v420_v31 = vsel %vm419_vm4, %v1414_v24, %v416_v28 }
  0xaa   :  { %v425_v34 = vsel %vm422_vm5, %v424_v32, %v420_v31 }
  0xab   :  { %v428_v36 = vmul.f32 0.0, %v425_v34 }
 0x107   :  { %v296_v20 = vpop.f32.mrf.mxu2 }
 0x108   :  { %v431_v33 = vpop.permute.xlu0 %430  ;;  %v334_v21 = vadd.f32 %v296_v20, %v177_v19  ;;  %v216_v20 = vld [vmem:[%s1864_s0 + $0x30] sm:$0xff] }
 0x109   :  { %v433_v35 = vmul.f32 %v431_v33, %v425_v34  ;;  %1366 = vmatmul.msk.f32.gmra.mxu2 %vm41_vm1, %v216_v20  ;;  %1336 = vmatmul.msk.f32.gmra.mxu0 %vm41_vm1, %v216_v20 }
 0x10a   :  { %v352_v22 = vadd.f32 %v1626_v14, %v334_v21  ;;  %1352 = vmatmul.msk.f32.gmra.mxu1 %vm41_vm1, %v216_v20 }
 0x10b   :  { %435 = vrot.lane.b32.xlu0 %v433_v35, %s1528_s19 }
 0x17d   :  { %v436_v37 = vpop.permute.xlu0 %435 }
 0x17e   :  { %v438_v38 = vadd.f32 %v436_v37, %v428_v36 }
 0x180   :  { %1415 = vtanh.f32 %v438_v38 }
 0x186   :  { %v1416_v39 = vpop.eup %1415 }
 0x187   :  { %441 = vrot.lane.b32.xlu1 %v1416_v39, %s1527_s18 }
 0x1f9   :  { %v442_v41 = vpop.permute.xlu1 %441 }
 0x1fa   :  { %v1638_v42 = vmul.f32 %v442_v41, %v425_v34 }
 0x1fc   :  { %448 = vrot.lane.b32.xlu1 %v1638_v42, %s1528_s19 }
 0x26e   :  { %v449_v43 = vpop.permute.xlu1 %448 }
 0x26f   :  { %1377 = vmatmul.msk.f32.vlgmr.msrb.gmra.mxu3 %vm383_vm6, %v449_v43 }
 0x270   :  { %594 = vmatpush.msrb.mxu3 %v1567_v0 }
 0x272   :  { %595 = vmatpush.msrb.mxu3 %v1575_v2 }
 0x274   :  { %596 = vmatpush.msrb.mxu3 %v1589_v5 }
 0x276   :  { %597 = vmatpush.msrb.mxu3 %v1606_v9 }
 0x2f2   :  { %v469_v50 = vpop.f32.mrf.mxu3 }
 0x2f3   :  { %v472_v51 = vadd.f32 %v469_v50, %v351_v49 }
 0x2f5   :  { %1417 = vtanh.f32 %v472_v51  ;;  %v1378_v53 = vmul.f32 -1.442695, %v472_v51 }
 0x2f7   :  { %1419 = vpow2.f32 %v1378_v53  ;;  %v179_v53 = vpop.f32.mrf.mxu1 }
 0x2fb   :  { %v1418_v52 = vpop.eup %1417 }
 0x2fc   :  { %495 = vrot.lane.b32.xlu2 %v1418_v52, %s1527_s18  ;;  %v114_v52 = vpop.f32.mrf.mxu0 }
 0x2fd   :  { %v1420_v54 = vpop.eup %1419 }
 0x2fe   :  { %v476_v55 = vadd.f32 1.0, %v1420_v54  ;;  %v180_v54 = vadd.f32 %v179_v53, %v114_v52 }
 0x300   :  { %1421 = vrcp.f32 %v476_v55  ;;  %v488_v61 = vand.u32 2147483648, %v476_v55  ;;  %vm482_vm8 = vweird.f32 %v476_v55  ;;  %v486_v62 = vand.u32 2147483647, %v476_v55 }
 0x302   :  { %v489_v1 = vor.u32 1.1754944e-38, %v488_v61  ;;  %vm487_vm10 = vcmp.eq.f32.partialorder %v486_v62, 8.507059e+37 }
 0x306   :  { %v1422_v56 = vpop.eup %1421 }
 0x307   :  { %v478_v57 = vmul.f32 %v1422_v56, %v476_v55  ;;  %vm483_vm7 = vweird.f32 %v1422_v56  ;;  %v299_v55 = vpop.f32.mrf.mxu2 }
 0x308   :  { %vm484_vm9 = vmor %vm482_vm8, %vm483_vm7 }
 0x309   :  { %v479_v58 = vsub.f32 1.0, %v478_v57 }
 0x30b   :  { %v480_v59 = vmul.f32 %v1422_v56, %v479_v58 }
 0x30d   :  { %v481_v60 = vadd.f32 %v1422_v56, %v480_v59 }
 0x30f   :  { %v485_v63 = vsel %vm484_vm9, %v1422_v56, %v481_v60 }
 0x310   :  { %v490_v4 = vsel %vm487_vm10, %v489_v1, %v485_v63 }
 0x311   :  { %v493_v7 = vmul.f32 %v490_v4, %v438_v38 }
 0x356   :  { %v496_v3 = vpop.permute.xlu2 %495 }
 0x357   :  { %v498_v6 = vmul.f32 %v496_v3, %v490_v4 }
 0x359   :  { %500 = vrot.lane.b32.xlu2 %v498_v6, %s1528_s19 }
 0x3b3   :  { %v501_v8 = vpop.permute.xlu2 %500 }
 0x3b4   :  { %v503_v10 = vadd.f32 %v501_v8, %v493_v7 }
 0x3b6   :  { %1423 = vtanh.f32 %v503_v10 }
 0x3bc   :  { %v1424_v11 = vpop.eup %1423 }
 0x3bd   :  { %506 = vrot.lane.b32.xlu0 %v1424_v11, %s1527_s18 }
 0x42f   :  { %v507_v13 = vpop.permute.xlu0 %506 }
 0x430   :  { %v509_v15 = vmul.f32 %v507_v13, %v490_v4 }
 0x432   :  { %513 = vrot.lane.b32.xlu1 %v509_v15, %s1528_s19  ;;  %v510_v48 = vadd.f32 %v509_v15, %v1638_v42  ;;  %v335_v42 = vadd.f32 %v299_v55, %v180_v54  ;;  %v217_v54 = vld [vmem:[%s1864_s0 + $0x38] sm:$0xff] }
 0x433   :  { %1367 = vmatmul.msk.f32.gmra.mxu2 %vm41_vm1, %v217_v54  ;;  %1337 = vmatmul.msk.f32.gmra.mxu0 %vm41_vm1, %v217_v54 }
 0x434   :  { %v353_v56 = vadd.f32 %v1626_v14, %v335_v42  ;;  %1353 = vmatmul.msk.f32.gmra.mxu1 %vm41_vm1, %v217_v54 }
 0x4a4   :  { %v514_v16 = vpop.permute.xlu1 %513 }
 0x4a5   :  { %1379 = vmatmul.msk.f32.vlgmr.msra.gmra.mxu3 %vm383_vm6, %v514_v16 }
 0x4a6   :  { %659 = vmatpush.msra.mxu3 %v1567_v0 }
 0x4a8   :  { %660 = vmatpush.msra.mxu3 %v1575_v2 }
 0x4aa   :  { %661 = vmatpush.msra.mxu3 %v1589_v5 }
 0x4ac   :  { %662 = vmatpush.msra.mxu3 %v1606_v9 }
 0x528   :  { %v534_v23 = vpop.f32.mrf.mxu3 }
 0x529   :  { %v537_v24 = vadd.f32 %v534_v23, %v352_v22 }
 0x52b   :  { %1425 = vtanh.f32 %v537_v24  ;;  %v1380_v26 = vmul.f32 -1.442695, %v537_v24 }
 0x52d   :  { %1427 = vpow2.f32 %v1380_v26  ;;  %v182_v26 = vpop.f32.mrf.mxu1 }
 0x531   :  { %v1426_v25 = vpop.eup %1425 }
 0x532   :  { %560 = vrot.lane.b32.xlu2 %v1426_v25, %s1527_s18  ;;  %v117_v25 = vpop.f32.mrf.mxu0 }
 0x533   :  { %v1428_v27 = vpop.eup %1427 }
 0x534   :  { %v541_v28 = vadd.f32 1.0, %v1428_v27  ;;  %v183_v27 = vadd.f32 %v182_v26, %v117_v25 }
 0x536   :  { %1429 = vrcp.f32 %v541_v28  ;;  %v553_v34 = vand.u32 2147483648, %v541_v28  ;;  %vm547_vm12 = vweird.f32 %v541_v28  ;;  %v551_v35 = vand.u32 2147483647, %v541_v28 }
 0x538   :  { %v554_v37 = vor.u32 1.1754944e-38, %v553_v34  ;;  %vm552_vm14 = vcmp.eq.f32.partialorder %v551_v35, 8.507059e+37 }
 0x53c   :  { %v1430_v29 = vpop.eup %1429 }
 0x53d   :  { %v543_v30 = vmul.f32 %v1430_v29, %v541_v28  ;;  %vm548_vm11 = vweird.f32 %v1430_v29  ;;  %v302_v28 = vpop.f32.mrf.mxu2 }
 0x53e   :  { %vm549_vm13 = vmor %vm547_vm12, %vm548_vm11 }
 0x53f   :  { %v544_v31 = vsub.f32 1.0, %v543_v30 }
 0x541   :  { %v545_v32 = vmul.f32 %v1430_v29, %v544_v31 }
 0x543   :  { %v546_v33 = vadd.f32 %v1430_v29, %v545_v32 }
 0x545   :  { %v550_v36 = vsel %vm549_vm13, %v1430_v29, %v546_v33  ;;  %v336_v29 = vadd.f32 %v302_v28, %v183_v27  ;;  %v218_v27 = vld [vmem:[%s1864_s0 + $0x40] sm:$0xff] }
 0x546   :  { %v555_v39 = vsel %vm552_vm14, %v554_v37, %v550_v36  ;;  %1368 = vmatmul.msk.f32.gmra.mxu2 %vm41_vm1, %v218_v27  ;;  %1338 = vmatmul.msk.f32.gmra.mxu0 %vm41_vm1, %v218_v27 }
 0x547   :  { %v558_v41 = vmul.f32 %v555_v39, %v503_v10  ;;  %v354_v30 = vadd.f32 %v1626_v14, %v336_v29  ;;  %1354 = vmatmul.msk.f32.gmra.mxu1 %vm41_vm1, %v218_v27 }
 0x58c   :  { %v561_v38 = vpop.permute.xlu2 %560 }
 0x58d   :  { %v563_v40 = vmul.f32 %v561_v38, %v555_v39 }
 0x58f   :  { %565 = vrot.lane.b32.xlu0 %v563_v40, %s1528_s19 }
 0x601   :  { %v566_v43 = vpop.permute.xlu0 %565 }
 0x602   :  { %v568_v44 = vadd.f32 %v566_v43, %v558_v41 }
 0x604   :  { %1431 = vtanh.f32 %v568_v44 }
 0x60a   :  { %v1432_v45 = vpop.eup %1431 }
 0x60b   :  { %571 = vrot.lane.b32.xlu1 %v1432_v45, %s1527_s18 }
 0x67d   :  { %v572_v47 = vpop.permute.xlu1 %571 }
 0x67e   :  { %v574_v49 = vmul.f32 %v572_v47, %v555_v39 }
 0x680   :  { %v575_v50 = vadd.f32 %v574_v49, %v510_v48  ;;  %578 = vrot.lane.b32.xlu2 %v574_v49, %s1528_s19 }
 0x6da   :  { %v579_v51 = vpop.permute.xlu2 %578 }
 0x6db   :  { %1381 = vmatmul.msk.f32.vlgmr.msrb.gmra.mxu3 %vm383_vm6, %v579_v51 }
 0x6dc   :  { %724 = vmatpush.msrb.mxu3 %v1567_v0 }
 0x6de   :  { %725 = vmatpush.msrb.mxu3 %v1575_v2 }
 0x6e0   :  { %726 = vmatpush.msrb.mxu3 %v1589_v5 }
 0x6e2   :  { %727 = vmatpush.msrb.mxu3 %v1606_v9 }
 0x75e   :  { %v599_v57 = vpop.f32.mrf.mxu3 }
 0x75f   :  { %v602_v58 = vadd.f32 %v599_v57, %v353_v56 }
 0x761   :  { %1433 = vtanh.f32 %v602_v58  ;;  %v1382_v60 = vmul.f32 -1.442695, %v602_v58  ;;  %v120_v58 = vpop.f32.mrf.mxu0 }
 0x763   :  { %1435 = vpow2.f32 %v1382_v60 }
 0x767   :  { %v1434_v59 = vpop.eup %1433 }
 0x768   :  { %625 = vrot.lane.b32.xlu0 %v1434_v59, %s1527_s18  ;;  %v185_v59 = vpop.f32.mrf.mxu1 }
 0x769   :  { %v1436_v61 = vpop.eup %1435  ;;  %v186_v60 = vadd.f32 %v185_v59, %v120_v58 }
 0x76a   :  { %v606_v62 = vadd.f32 1.0, %v1436_v61  ;;  %v305_v61 = vpop.f32.mrf.mxu2 }
 0x76c   :  { %1437 = vrcp.f32 %v606_v62  ;;  %v618_v7 = vand.u32 2147483648, %v606_v62  ;;  %vm612_vm0 = vweird.f32 %v606_v62  ;;  %v616_v8 = vand.u32 2147483647, %v606_v62 }
 0x76e   :  { %v619_v11 = vor.u32 1.1754944e-38, %v618_v7  ;;  %vm617_vm3 = vcmp.eq.f32.partialorder %v616_v8, 8.507059e+37 }
 0x772   :  { %v1438_v63 = vpop.eup %1437 }
 0x773   :  { %v608_v1 = vmul.f32 %v1438_v63, %v606_v62  ;;  %vm613_vm15 = vweird.f32 %v1438_v63  ;;  %v337_v62 = vadd.f32 %v305_v61, %v186_v60  ;;  %v219_v60 = vld [vmem:[%s1864_s0 + $0x48] sm:$0xff] }
 0x774   :  { %vm614_vm2 = vmor %vm612_vm0, %vm613_vm15  ;;  %1369 = vmatmul.msk.f32.gmra.mxu2 %vm41_vm1, %v219_v60  ;;  %1339 = vmatmul.msk.f32.gmra.mxu0 %vm41_vm1, %v219_v60 }
 0x775   :  { %v609_v3 = vsub.f32 1.0, %v608_v1  ;;  %1355 = vmatmul.msk.f32.gmra.mxu1 %vm41_vm1, %v219_v60 }
 0x777   :  { %v610_v4 = vmul.f32 %v1438_v63, %v609_v3 }
 0x779   :  { %v611_v6 = vadd.f32 %v1438_v63, %v610_v4 }
 0x77b   :  { %v615_v10 = vsel %vm614_vm2, %v1438_v63, %v611_v6  ;;  %v355_v63 = vadd.f32 %v1626_v14, %v337_v62 }
 0x77c   :  { %v620_v13 = vsel %vm617_vm3, %v619_v11, %v615_v10 }
 0x77d   :  { %v623_v16 = vmul.f32 %v620_v13, %v568_v44 }
 0x7da   :  { %v626_v12 = vpop.permute.xlu0 %625 }
 0x7db   :  { %v628_v15 = vmul.f32 %v626_v12, %v620_v13 }
 0x7dd   :  { %630 = vrot.lane.b32.xlu1 %v628_v15, %s1528_s19 }
 0x84f   :  { %v631_v17 = vpop.permute.xlu1 %630 }
 0x850   :  { %v633_v18 = vadd.f32 %v631_v17, %v623_v16 }
 0x852   :  { %1439 = vtanh.f32 %v633_v18 }
 0x858   :  { %v1440_v19 = vpop.eup %1439 }
 0x859   :  { %636 = vrot.lane.b32.xlu2 %v1440_v19, %s1527_s18 }
 0x8b3   :  { %v637_v21 = vpop.permute.xlu2 %636 }
 0x8b4   :  { %v639_v22 = vmul.f32 %v637_v21, %v620_v13 }
 0x8b6   :  { %v640_v23 = vadd.f32 %v639_v22, %v575_v50  ;;  %643 = vrot.lane.b32.xlu0 %v639_v22, %s1528_s19 }
 0x928   :  { %v644_v24 = vpop.permute.xlu0 %643 }
 0x929   :  { %1383 = vmatmul.msk.f32.vlgmr.msra.gmra.mxu3 %vm383_vm6, %v644_v24 }
 0x92a   :  { %789 = vmatpush.msra.mxu3 %v1567_v0 }
 0x92c   :  { %790 = vmatpush.msra.mxu3 %v1575_v2 }
 0x92e   :  { %791 = vmatpush.msra.mxu3 %v1589_v5 }
 0x930   :  { %792 = vmatpush.msra.mxu3 %v1606_v9 }
 0x9ac   :  { %v664_v31 = vpop.f32.mrf.mxu3 }
 0x9ad   :  { %v667_v32 = vadd.f32 %v664_v31, %v354_v30 }
 0x9af   :  { %1441 = vtanh.f32 %v667_v32  ;;  %v1384_v34 = vmul.f32 -1.442695, %v667_v32  ;;  %v123_v32 = vpop.f32.mrf.mxu0 }
 0x9b1   :  { %1443 = vpow2.f32 %v1384_v34 }
 0x9b5   :  { %v1442_v33 = vpop.eup %1441 }
 0x9b6   :  { %690 = vrot.lane.b32.xlu1 %v1442_v33, %s1527_s18  ;;  %v188_v33 = vpop.f32.mrf.mxu1 }
 0x9b7   :  { %v1444_v35 = vpop.eup %1443  ;;  %v189_v34 = vadd.f32 %v188_v33, %v123_v32 }
 0x9b8   :  { %v671_v36 = vadd.f32 1.0, %v1444_v35  ;;  %v308_v35 = vpop.f32.mrf.mxu2 }
 0x9ba   :  { %1445 = vrcp.f32 %v671_v36  ;;  %v683_v43 = vand.u32 2147483648, %v671_v36  ;;  %vm677_vm5 = vweird.f32 %v671_v36  ;;  %v681_v44 = vand.u32 2147483647, %v671_v36 }
 0x9bc   :  { %v684_v46 = vor.u32 1.1754944e-38, %v683_v43  ;;  %vm682_vm8 = vcmp.eq.f32.partialorder %v681_v44, 8.507059e+37 }
 0x9c0   :  { %v1446_v37 = vpop.eup %1445 }
 0x9c1   :  { %v673_v38 = vmul.f32 %v1446_v37, %v671_v36  ;;  %vm678_vm4 = vweird.f32 %v1446_v37  ;;  %v338_v36 = vadd.f32 %v308_v35, %v189_v34  ;;  %v220_v34 = vld [vmem:[%s1864_s0 + $0x50] sm:$0xff] }
 0x9c2   :  { %vm679_vm7 = vmor %vm677_vm5, %vm678_vm4  ;;  %1370 = vmatmul.msk.f32.gmra.mxu2 %vm41_vm1, %v220_v34  ;;  %1340 = vmatmul.msk.f32.gmra.mxu0 %vm41_vm1, %v220_v34 }
 0x9c3   :  { %v674_v39 = vsub.f32 1.0, %v673_v38  ;;  %1356 = vmatmul.msk.f32.gmra.mxu1 %vm41_vm1, %v220_v34 }
 0x9c5   :  { %v675_v40 = vmul.f32 %v1446_v37, %v674_v39 }
 0x9c7   :  { %v676_v41 = vadd.f32 %v1446_v37, %v675_v40 }
 0x9c9   :  { %v680_v45 = vsel %vm679_vm7, %v1446_v37, %v676_v41  ;;  %v356_v37 = vadd.f32 %v1626_v14, %v338_v36 }
 0x9ca   :  { %v685_v48 = vsel %vm682_vm8, %v684_v46, %v680_v45 }
 0x9cb   :  { %v688_v50 = vmul.f32 %v685_v48, %v633_v18 }
 0xa28   :  { %v691_v47 = vpop.permute.xlu1 %690 }
 0xa29   :  { %v693_v49 = vmul.f32 %v691_v47, %v685_v48 }
 0xa2b   :  { %695 = vrot.lane.b32.xlu2 %v693_v49, %s1528_s19 }
 0xa85   :  { %v696_v51 = vpop.permute.xlu2 %695 }
 0xa86   :  { %v698_v52 = vadd.f32 %v696_v51, %v688_v50 }
 0xa88   :  { %1447 = vtanh.f32 %v698_v52 }
 0xa8e   :  { %v1448_v53 = vpop.eup %1447 }
 0xa8f   :  { %701 = vrot.lane.b32.xlu0 %v1448_v53, %s1527_s18 }
 0xb01   :  { %v702_v55 = vpop.permute.xlu0 %701 }
 0xb02   :  { %v704_v42 = vmul.f32 %v702_v55, %v685_v48 }
 0xb04   :  { %v705_v56 = vadd.f32 %v704_v42, %v640_v23  ;;  %708 = vrot.lane.b32.xlu1 %v704_v42, %s1528_s19 }
 0xb76   :  { %v709_v57 = vpop.permute.xlu1 %708 }
 0xb77   :  { %1385 = vmatmul.msk.f32.vlgmr.msrb.gmra.mxu3 %vm383_vm6, %v709_v57 }
 0xb78   :  { %854 = vmatpush.msrb.mxu3 %v1567_v0 }
 0xb7a   :  { %855 = vmatpush.msrb.mxu3 %v1575_v2 }
 0xb7c   :  { %856 = vmatpush.msrb.mxu3 %v1589_v5 }
 0xb7e   :  { %857 = vmatpush.msrb.mxu3 %v1606_v9 }
 0xbfa   :  { %v729_v1 = vpop.f32.mrf.mxu3 }
 0xbfb   :  { %v732_v3 = vadd.f32 %v729_v1, %v355_v63 }
 0xbfd   :  { %1449 = vtanh.f32 %v732_v3  ;;  %v1386_v6 = vmul.f32 -1.442695, %v732_v3  ;;  %v126_v3 = vpop.f32.mrf.mxu0 }
 0xbff   :  { %1451 = vpow2.f32 %v1386_v6 }
 0xc03   :  { %v1450_v4 = vpop.eup %1449 }
 0xc04   :  { %755 = vrot.lane.b32.xlu2 %v1450_v4, %s1527_s18  ;;  %v191_v4 = vpop.f32.mrf.mxu1 }
 0xc05   :  { %v1452_v7 = vpop.eup %1451  ;;  %v192_v6 = vadd.f32 %v191_v4, %v126_v3 }
 0xc06   :  { %v736_v8 = vadd.f32 1.0, %v1452_v7  ;;  %v311_v7 = vpop.f32.mrf.mxu2 }
 0xc08   :  { %1453 = vrcp.f32 %v736_v8  ;;  %v748_v16 = vand.u32 2147483648, %v736_v8  ;;  %vm742_vm10 = vweird.f32 %v736_v8  ;;  %v746_v17 = vand.u32 2147483647, %v736_v8 }
 0xc0a   :  { %v749_v19 = vor.u32 1.1754944e-38, %v748_v16  ;;  %vm747_vm12 = vcmp.eq.f32.partialorder %v746_v17, 8.507059e+37 }
 0xc0e   :  { %v1454_v10 = vpop.eup %1453 }
 0xc0f   :  { %v738_v11 = vmul.f32 %v1454_v10, %v736_v8  ;;  %vm743_vm9 = vweird.f32 %v1454_v10  ;;  %v339_v8 = vadd.f32 %v311_v7, %v192_v6  ;;  %v221_v6 = vld [vmem:[%s1864_s0 + $0x58] sm:$0xff] }
 0xc10   :  { %vm744_vm11 = vmor %vm742_vm10, %vm743_vm9  ;;  %1371 = vmatmul.msk.f32.gmra.mxu2 %vm41_vm1, %v221_v6  ;;  %1341 = vmatmul.msk.f32.gmra.mxu0 %vm41_vm1, %v221_v6 }
 0xc11   :  { %v739_v12 = vsub.f32 1.0, %v738_v11  ;;  %1357 = vmatmul.msk.f32.gmra.mxu1 %vm41_vm1, %v221_v6 }
 0xc13   :  { %v740_v13 = vmul.f32 %v1454_v10, %v739_v12 }
 0xc15   :  { %v741_v15 = vadd.f32 %v1454_v10, %v740_v13 }
 0xc17   :  { %v745_v18 = vsel %vm744_vm11, %v1454_v10, %v741_v15  ;;  %v357_v10 = vadd.f32 %v1626_v14, %v339_v8 }
 0xc18   :  { %v750_v21 = vsel %vm747_vm12, %v749_v19, %v745_v18 }
 0xc19   :  { %v753_v23 = vmul.f32 %v750_v21, %v698_v52 }
 0xc5e   :  { %v756_v20 = vpop.permute.xlu2 %755 }
 0xc5f   :  { %v758_v22 = vmul.f32 %v756_v20, %v750_v21 }
 0xc61   :  { %760 = vrot.lane.b32.xlu0 %v758_v22, %s1528_s19 }
 0xcd3   :  { %v761_v24 = vpop.permute.xlu0 %760 }
 0xcd4   :  { %v763_v25 = vadd.f32 %v761_v24, %v753_v23 }
 0xcd6   :  { %1455 = vtanh.f32 %v763_v25 }
 0xcdc   :  { %v1456_v26 = vpop.eup %1455 }
 0xcdd   :  { %766 = vrot.lane.b32.xlu1 %v1456_v26, %s1527_s18 }
 0xd4f   :  { %v767_v28 = vpop.permute.xlu1 %766 }
 0xd50   :  { %v769_v29 = vmul.f32 %v767_v28, %v750_v21 }
 0xd52   :  { %v770_v30 = vadd.f32 %v769_v29, %v705_v56  ;;  %773 = vrot.lane.b32.xlu2 %v769_v29, %s1528_s19 }
 0xdac   :  { %v774_v31 = vpop.permute.xlu2 %773 }
 0xdad   :  { %1387 = vmatmul.msk.f32.vlgmr.msra.gmra.mxu3 %vm383_vm6, %v774_v31 }
 0xdae   :  { %919 = vmatpush.msra.mxu3 %v1567_v0 }
 0xdb0   :  { %920 = vmatpush.msra.mxu3 %v1575_v2 }
 0xdb2   :  { %921 = vmatpush.msra.mxu3 %v1589_v5 }
 0xdb4   :  { %922 = vmatpush.msra.mxu3 %v1606_v9 }
 0xe30   :  { %v794_v38 = vpop.f32.mrf.mxu3 }
 0xe31   :  { %v797_v39 = vadd.f32 %v794_v38, %v356_v37 }
 0xe33   :  { %1457 = vtanh.f32 %v797_v39  ;;  %v1388_v41 = vmul.f32 -1.442695, %v797_v39  ;;  %v129_v39 = vpop.f32.mrf.mxu0 }
 0xe35   :  { %1459 = vpow2.f32 %v1388_v41 }
 0xe39   :  { %v1458_v40 = vpop.eup %1457 }
 0xe3a   :  { %820 = vrot.lane.b32.xlu0 %v1458_v40, %s1527_s18  ;;  %v194_v40 = vpop.f32.mrf.mxu1 }
 0xe3b   :  { %v1460_v43 = vpop.eup %1459  ;;  %v195_v41 = vadd.f32 %v194_v40, %v129_v39 }
 0xe3c   :  { %v801_v44 = vadd.f32 1.0, %v1460_v43  ;;  %v314_v43 = vpop.f32.mrf.mxu2 }
 0xe3e   :  { %1461 = vrcp.f32 %v801_v44  ;;  %v813_v50 = vand.u32 2147483648, %v801_v44  ;;  %vm807_vm14 = vweird.f32 %v801_v44  ;;  %v811_v51 = vand.u32 2147483647, %v801_v44 }
 0xe40   :  { %v814_v53 = vor.u32 1.1754944e-38, %v813_v50  ;;  %vm812_vm0 = vcmp.eq.f32.partialorder %v811_v51, 8.507059e+37 }
 0xe44   :  { %v1462_v45 = vpop.eup %1461 }
 0xe45   :  { %v803_v46 = vmul.f32 %v1462_v45, %v801_v44  ;;  %vm808_vm13 = vweird.f32 %v1462_v45  ;;  %v340_v44 = vadd.f32 %v314_v43, %v195_v41  ;;  %v1521_v41 = vld [vmem:[%s1862_s3 + $0x18] sm:$0xff]  ;;  %v1522_v43 = vld [vmem:[%s1862_s3 + $0x10] sm:$0xff] }
 0xe46   :  { %vm809_vm15 = vmor %vm807_vm14, %vm808_vm13 }
 0xe47   :  { %v804_v47 = vsub.f32 1.0, %v803_v46 }
 0xe49   :  { %v805_v48 = vmul.f32 %v1462_v45, %v804_v47 }
 0xe4b   :  { %v806_v49 = vadd.f32 %v1462_v45, %v805_v48 }
 0xe4d   :  { %v810_v52 = vsel %vm809_vm15, %v1462_v45, %v806_v49  ;;  %v358_v45 = vadd.f32 %v1626_v14, %v340_v44  ;;  %v1523_v44 = vld [vmem:[%s1862_s3 + $0x8] sm:$0xff] }
 0xe4e   :  { %v815_v55 = vsel %vm812_vm0, %v814_v53, %v810_v52 }
 0xe4f   :  { %v818_v56 = vmul.f32 %v815_v55, %v763_v25 }
 0xeac   :  { %v821_v54 = vpop.permute.xlu0 %820 }
 0xead   :  { %v823_v42 = vmul.f32 %v821_v54, %v815_v55 }
 0xeaf   :  { %825 = vrot.lane.b32.xlu1 %v823_v42, %s1528_s19 }
 0xf21   :  { %v826_v57 = vpop.permute.xlu1 %825 }
 0xf22   :  { %v828_v58 = vadd.f32 %v826_v57, %v818_v56 }
 0xf24   :  { %1463 = vtanh.f32 %v828_v58 }
 0xf2a   :  { %v1464_v59 = vpop.eup %1463 }
 0xf2b   :  { %831 = vrot.lane.b32.xlu2 %v1464_v59, %s1527_s18 }
 0xf85   :  { %v832_v61 = vpop.permute.xlu2 %831 }
 0xf86   :  { %v834_v62 = vmul.f32 %v832_v61, %v815_v55 }
 0xf88   :  { %v835_v63 = vadd.f32 %v834_v62, %v770_v30  ;;  %838 = vrot.lane.b32.xlu0 %v834_v62, %s1528_s19 }
 0xffa   :  { %v839_v1 = vpop.permute.xlu0 %838 }
 0xffb   :  { %1389 = vmatmul.msk.f32.vlgmr.msrb.gmra.mxu3 %vm383_vm6, %v839_v1 }
 0xffc   :  { %984 = vmatpush.msrb.mxu3 %v1567_v0 }
 0xffe   :  { %985 = vmatpush.msrb.mxu3 %v1575_v2 }
0x1000   :  { %986 = vmatpush.msrb.mxu3 %v1589_v5 }
0x1002   :  { %987 = vmatpush.msrb.mxu3 %v1606_v9 }
0x107e   :  { %v859_v11 = vpop.f32.mrf.mxu3 }
0x107f   :  { %v862_v12 = vadd.f32 %v859_v11, %v357_v10 }
0x1081   :  { %1465 = vtanh.f32 %v862_v12  ;;  %v1390_v15 = vmul.f32 -1.442695, %v862_v12  ;;  %v132_v12 = vpop.f32.mrf.mxu0 }
0x1083   :  { %1467 = vpow2.f32 %v1390_v15 }
0x1087   :  { %v1466_v13 = vpop.eup %1465 }
0x1088   :  { %885 = vrot.lane.b32.xlu1 %v1466_v13, %s1527_s18  ;;  %v197_v13 = vpop.f32.mrf.mxu1 }
0x1089   :  { %v1468_v16 = vpop.eup %1467  ;;  %v198_v15 = vadd.f32 %v197_v13, %v132_v12 }
0x108a   :  { %v866_v17 = vadd.f32 1.0, %v1468_v16  ;;  %v317_v16 = vpop.f32.mrf.mxu2 }
0x108c   :  { %1469 = vrcp.f32 %v866_v17  ;;  %v878_v23 = vand.u32 2147483648, %v866_v17  ;;  %vm872_vm3 = vweird.f32 %v866_v17  ;;  %v876_v24 = vand.u32 2147483647, %v866_v17 }
0x108e   :  { %v879_v26 = vor.u32 1.1754944e-38, %v878_v23  ;;  %vm877_vm5 = vcmp.eq.f32.partialorder %v876_v24, 8.507059e+37 }
0x1092   :  { %v1470_v18 = vpop.eup %1469 }
0x1093   :  { %v868_v19 = vmul.f32 %v1470_v18, %v866_v17  ;;  %vm873_vm2 = vweird.f32 %v1470_v18  ;;  %v341_v17 = vadd.f32 %v317_v16, %v198_v15  ;;  %v223_v15 = vld [vmem:[%s1864_s0 + $0x68] sm:$0xff] }
0x1094   :  { %vm874_vm4 = vmor %vm872_vm3, %vm873_vm2 }
0x1095   :  { %v869_v20 = vsub.f32 1.0, %v868_v19 }
0x1097   :  { %v870_v21 = vmul.f32 %v1470_v18, %v869_v20 }
0x1099   :  { %v871_v22 = vadd.f32 %v1470_v18, %v870_v21 }
0x109b   :  { %v875_v25 = vsel %vm874_vm4, %v1470_v18, %v871_v22  ;;  %v359_v18 = vadd.f32 %v1626_v14, %v341_v17 }
0x109c   :  { %v880_v28 = vsel %vm877_vm5, %v879_v26, %v875_v25 }
0x109d   :  { %v883_v30 = vmul.f32 %v880_v28, %v828_v58 }
0x10fa   :  { %v886_v27 = vpop.permute.xlu1 %885 }
0x10fb   :  { %v888_v29 = vmul.f32 %v886_v27, %v880_v28 }
0x10fd   :  { %890 = vrot.lane.b32.xlu2 %v888_v29, %s1528_s19 }
0x1157   :  { %v891_v31 = vpop.permute.xlu2 %890 }
0x1158   :  { %v893_v32 = vadd.f32 %v891_v31, %v883_v30 }
0x115a   :  { %1471 = vtanh.f32 %v893_v32 }
0x1160   :  { %v1472_v33 = vpop.eup %1471 }
0x1161   :  { %896 = vrot.lane.b32.xlu0 %v1472_v33, %s1527_s18 }
0x11d3   :  { %v897_v35 = vpop.permute.xlu0 %896 }
0x11d4   :  { %v899_v36 = vmul.f32 %v897_v35, %v880_v28 }
0x11d6   :  { %v900_v37 = vadd.f32 %v899_v36, %v835_v63  ;;  %903 = vrot.lane.b32.xlu1 %v899_v36, %s1528_s19  ;;  %v222_v36 = vld [vmem:[%s1864_s0 + $0x60] sm:$0xff] }
0x11d7   :  { %1372 = vmatmul.msk.f32.gmra.mxu2 %vm41_vm1, %v222_v36  ;;  %1342 = vmatmul.msk.f32.gmra.mxu0 %vm41_vm1, %v222_v36 }
0x11d8   :  { %1358 = vmatmul.msk.f32.gmra.mxu1 %vm41_vm1, %v222_v36 }
0x11df   :  { %1373 = vmatmul.msk.f32.gmra.mxu2 %vm41_vm1, %v223_v15  ;;  %1343 = vmatmul.msk.f32.gmra.mxu0 %vm41_vm1, %v223_v15 }
0x11e0   :  { %1359 = vmatmul.msk.f32.gmra.mxu1 %vm41_vm1, %v223_v15 }
0x1248   :  { %v904_v38 = vpop.permute.xlu1 %903 }
0x1249   :  { %1391 = vmatmul.msk.f32.vlgmr.msra.gmra.mxu3 %vm383_vm6, %v904_v38 }
0x124a   :  { %1049 = vmatpush.msra.mxu3 %v1567_v0 }
0x124c   :  { %1050 = vmatpush.msra.mxu3 %v1575_v2 }
0x124e   :  { %1051 = vmatpush.msra.mxu3 %v1589_v5 }
0x1250   :  { %1052 = vmatpush.msra.mxu3 %v1606_v9 }
0x12cc   :  { %v924_v46 = vpop.f32.mrf.mxu3 }
0x12cd   :  { %v927_v47 = vadd.f32 %v924_v46, %v358_v45  ;;  %v1524_v45 = vld [vmem:[%s1862_s3] sm:$0xff]  ;;  %v135_v46 = vpop.f32.mrf.mxu0 }
0x12cf   :  { %1473 = vtanh.f32 %v927_v47  ;;  %v1392_v49 = vmul.f32 -1.442695, %v927_v47  ;;  %v200_v47 = vpop.f32.mrf.mxu1 }
0x12d1   :  { %1475 = vpow2.f32 %v1392_v49  ;;  %v320_v49 = vpop.f32.mrf.mxu2 }
0x12d5   :  { %v1474_v48 = vpop.eup %1473 }
0x12d6   :  { %950 = vrot.lane.b32.xlu2 %v1474_v48, %s1527_s18  ;;  %v201_v48 = vadd.f32 %v200_v47, %v135_v46 }
0x12d7   :  { %v1476_v50 = vpop.eup %1475 }
0x12d8   :  { %v931_v51 = vadd.f32 1.0, %v1476_v50  ;;  %v342_v50 = vadd.f32 %v320_v49, %v201_v48 }
0x12da   :  { %1477 = vrcp.f32 %v931_v51  ;;  %v943_v56 = vand.u32 2147483648, %v931_v51  ;;  %vm937_vm8 = vweird.f32 %v931_v51  ;;  %v941_v57 = vand.u32 2147483647, %v931_v51 }
0x12dc   :  { %v944_v59 = vor.u32 1.1754944e-38, %v943_v56  ;;  %vm942_vm10 = vcmp.eq.f32.partialorder %v941_v57, 8.507059e+37 }
0x12e0   :  { %v1478_v52 = vpop.eup %1477 }
0x12e1   :  { %v933_v53 = vmul.f32 %v1478_v52, %v931_v51  ;;  %vm938_vm7 = vweird.f32 %v1478_v52  ;;  %v1803_v51 = vld [vmem:[%s1865_s2] ss:$0 sm:$0xff] }
0x12e2   :  { %vm939_vm9 = vmor %vm937_vm8, %vm938_vm7 }
0x12e3   :  { %v934_v54 = vsub.f32 1.0, %v933_v53 }
0x12e5   :  { %v935_v55 = vmul.f32 %v1478_v52, %v934_v54 }
0x12e7   :  { %v936_v42 = vadd.f32 %v1478_v52, %v935_v55 }
0x12e9   :  { %v940_v58 = vsel %vm939_vm9, %v1478_v52, %v936_v42  ;;  %v360_v52 = vadd.f32 %v1803_v51, %v342_v50 }
0x12ea   :  { %v945_v61 = vsel %vm942_vm10, %v944_v59, %v940_v58 }
0x12eb   :  { %v948_v63 = vmul.f32 %v945_v61, %v893_v32 }
0x1330   :  { %v951_v60 = vpop.permute.xlu2 %950 }
0x1331   :  { %v953_v62 = vmul.f32 %v951_v60, %v945_v61 }
0x1333   :  { %955 = vrot.lane.b32.xlu0 %v953_v62, %s1528_s19 }
0x13a5   :  { %v956_v1 = vpop.permute.xlu0 %955 }
0x13a6   :  { %v958_v3 = vadd.f32 %v956_v1, %v948_v63 }
0x13a8   :  { %1479 = vtanh.f32 %v958_v3 }
0x13ae   :  { %v1480_v4 = vpop.eup %1479 }
0x13af   :  { %961 = vrot.lane.b32.xlu1 %v1480_v4, %s1527_s18 }
0x1421   :  { %v962_v7 = vpop.permute.xlu1 %961 }
0x1422   :  { %v964_v8 = vmul.f32 %v962_v7, %v945_v61 }
0x1424   :  { %v965_v10 = vadd.f32 %v964_v8, %v900_v37  ;;  %968 = vrot.lane.b32.xlu2 %v964_v8, %s1528_s19 }
0x147e   :  { %v969_v11 = vpop.permute.xlu2 %968 }
0x147f   :  { %1393 = vmatmul.msk.f32.vlgmr.msrb.gmra.mxu3 %vm383_vm6, %v969_v11 }
0x1480   :  { %1114 = vmatpush.msrb.mxu3 %v1567_v0 }
0x1482   :  { %1115 = vmatpush.msrb.mxu3 %v1575_v2 }
0x1484   :  { %1116 = vmatpush.msrb.mxu3 %v1589_v5 }
0x1486   :  { %1117 = vmatpush.msrb.mxu3 %v1606_v9 }
0x1502   :  { %v989_v19 = vpop.f32.mrf.mxu3 }
0x1503   :  { %v992_v20 = vadd.f32 %v989_v19, %v359_v18 }
0x1505   :  { %1481 = vtanh.f32 %v992_v20  ;;  %v1394_v0 = vmul.f32 -1.442695, %v992_v20  ;;  %v138_v20 = vpop.f32.mrf.mxu0 }
0x1507   :  { %1483 = vpow2.f32 %v1394_v0 }
0x150b   :  { %v1482_v21 = vpop.eup %1481 }
0x150c   :  { %1015 = vrot.lane.b32.xlu0 %v1482_v21, %s1527_s18  ;;  %v203_v21 = vpop.f32.mrf.mxu1 }
0x150d   :  { %v1484_v2 = vpop.eup %1483  ;;  %v204_v0 = vadd.f32 %v203_v21, %v138_v20  ;;  %v141_v49 = vpop.f32.mrf.mxu0 }
0x150e   :  { %v996_v22 = vadd.f32 1.0, %v1484_v2  ;;  %v323_v2 = vpop.f32.mrf.mxu2 }
0x1510   :  { %1485 = vrcp.f32 %v996_v22  ;;  %v1008_v26 = vand.u32 2147483648, %v996_v22  ;;  %vm1002_vm12 = vweird.f32 %v996_v22  ;;  %v1006_v14 = vand.u32 2147483647, %v996_v22 }
0x1512   :  { %v1009_v28 = vor.u32 1.1754944e-38, %v1008_v26  ;;  %vm1007_vm14 = vcmp.eq.f32.partialorder %v1006_v14, 8.507059e+37 }
0x1514   :  { %v206_v50 = vpop.f32.mrf.mxu1 }
0x1516   :  { %v1486_v5 = vpop.eup %1485 }
0x1517   :  { %v998_v9 = vmul.f32 %v1486_v5, %v996_v22  ;;  %vm1003_vm11 = vweird.f32 %v1486_v5  ;;  %v343_v22 = vadd.f32 %v323_v2, %v204_v0 }
0x1518   :  { %vm1004_vm13 = vmor %vm1002_vm12, %vm1003_vm11 }
0x1519   :  { %v999_v23 = vsub.f32 1.0, %v998_v9 }
0x151b   :  { %v1000_v24 = vmul.f32 %v1486_v5, %v999_v23 }
0x151d   :  { %v1001_v25 = vadd.f32 %v1486_v5, %v1000_v24 }
0x151f   :  { %v1005_v27 = vsel %vm1004_vm13, %v1486_v5, %v1001_v25  ;;  %v361_v5 = vadd.f32 %v1803_v51, %v343_v22  ;;  %v209_v22 = vpop.f32.mrf.mxu1 }
0x1520   :  { %v1010_v30 = vsel %vm1007_vm14, %v1009_v28, %v1005_v27 }
0x1521   :  { %v1013_v32 = vmul.f32 %v1010_v30, %v958_v3 }
0x157e   :  { %v1016_v29 = vpop.permute.xlu0 %1015 }
0x157f   :  { %v1018_v31 = vmul.f32 %v1016_v29, %v1010_v30 }
0x1581   :  { %1020 = vrot.lane.b32.xlu1 %v1018_v31, %s1528_s19 }
0x15f3   :  { %v1021_v33 = vpop.permute.xlu1 %1020 }
0x15f4   :  { %v1023_v34 = vadd.f32 %v1021_v33, %v1013_v32 }
0x15f6   :  { %1487 = vtanh.f32 %v1023_v34 }
0x15fc   :  { %v1488_v35 = vpop.eup %1487 }
0x15fd   :  { %1026 = vrot.lane.b32.xlu2 %v1488_v35, %s1527_s18 }
0x1657   :  { %v1027_v37 = vpop.permute.xlu2 %1026 }
0x1658   :  { %v1029_v38 = vmul.f32 %v1027_v37, %v1010_v30 }
0x165a   :  { %v1030_v39 = vadd.f32 %v1029_v38, %v965_v10  ;;  %1033 = vrot.lane.b32.xlu0 %v1029_v38, %s1528_s19 }
0x16cc   :  { %v1034_v40 = vpop.permute.xlu0 %1033 }
0x16cd   :  { %1395 = vmatmul.msk.f32.vlgmr.msra.gmra.mxu3 %vm383_vm6, %v1034_v40 }
0x16ce   :  { %1179 = vmatpush.msra.mxu3 %v1521_v41 }
0x16d0   :  { %1180 = vmatpush.msra.mxu3 %v1522_v43 }
0x16d2   :  { %1181 = vmatpush.msra.mxu3 %v1523_v44 }
0x16d4   :  { %1182 = vmatpush.msra.mxu3 %v1524_v45 }
0x1750   :  { %v1054_v53 = vpop.f32.mrf.mxu3 }
0x1751   :  { %v1057_v54 = vadd.f32 %v1054_v53, %v360_v52  ;;  %v207_v52 = vadd.f32 %v206_v50, %v141_v49  ;;  %v1291_v49 = vld [vmem:[%s1866_s4] sm:$0xff] }
0x1753   :  { %1489 = vtanh.f32 %v1057_v54  ;;  %v1396_v42 = vmul.f32 -1.442695, %v1057_v54 }
0x1755   :  { %1491 = vpow2.f32 %v1396_v42 }
0x1759   :  { %v1490_v55 = vpop.eup %1489 }
0x175a   :  { %1080 = vrot.lane.b32.xlu1 %v1490_v55, %s1527_s18 }
0x175b   :  { %v1492_v56 = vpop.eup %1491 }
0x175c   :  { %v1061_v57 = vadd.f32 1.0, %v1492_v56 }
0x175e   :  { %1493 = vrcp.f32 %v1061_v57  ;;  %v1073_v63 = vand.u32 2147483648, %v1061_v57  ;;  %vm1067_vm0 = vweird.f32 %v1061_v57  ;;  %v1071_v1 = vand.u32 2147483647, %v1061_v57 }
0x1760   :  { %v1074_v4 = vor.u32 1.1754944e-38, %v1073_v63  ;;  %vm1072_vm3 = vcmp.eq.f32.partialorder %v1071_v1, 8.507059e+37 }
0x1764   :  { %v1494_v58 = vpop.eup %1493 }
0x1765   :  { %v1063_v59 = vmul.f32 %v1494_v58, %v1061_v57  ;;  %vm1068_vm15 = vweird.f32 %v1494_v58 }
0x1766   :  { %vm1069_vm2 = vmor %vm1067_vm0, %vm1068_vm15 }
0x1767   :  { %v1064_v60 = vsub.f32 1.0, %v1063_v59 }
0x1769   :  { %v1065_v61 = vmul.f32 %v1494_v58, %v1064_v60 }
0x176b   :  { %v1066_v62 = vadd.f32 %v1494_v58, %v1065_v61 }
0x176d   :  { %v1070_v3 = vsel %vm1069_vm2, %v1494_v58, %v1066_v62 }
0x176e   :  { %v1075_v7 = vsel %vm1072_vm3, %v1074_v4, %v1070_v3 }
0x176f   :  { %v1078_v10 = vmul.f32 %v1075_v7, %v1023_v34 }
0x17cc   :  { %v1081_v6 = vpop.permute.xlu1 %1080 }
0x17cd   :  { %v1083_v8 = vmul.f32 %v1081_v6, %v1075_v7 }
0x17cf   :  { %1085 = vrot.lane.b32.xlu2 %v1083_v8, %s1528_s19 }
0x1829   :  { %v1086_v11 = vpop.permute.xlu2 %1085 }
0x182a   :  { %v1088_v12 = vadd.f32 %v1086_v11, %v1078_v10 }
0x182c   :  { %1495 = vtanh.f32 %v1088_v12 }
0x1832   :  { %v1496_v13 = vpop.eup %1495 }
0x1833   :  { %1091 = vrot.lane.b32.xlu0 %v1496_v13, %s1527_s18 }
0x18a5   :  { %v1092_v16 = vpop.permute.xlu0 %1091 }
0x18a6   :  { %v1094_v17 = vmul.f32 %v1092_v16, %v1075_v7 }
0x18a8   :  { %v1095_v18 = vadd.f32 %v1094_v17, %v1030_v39  ;;  %1098 = vrot.lane.b32.xlu1 %v1094_v17, %s1528_s19 }
0x191a   :  { %v1099_v19 = vpop.permute.xlu1 %1098 }
0x191b   :  { %1397 = vmatmul.msk.f32.vlgmr.msrb.gmra.mxu3 %vm383_vm6, %v1099_v19 }
0x191c   :  { %1244 = vmatpush.msrb.mxu3 %v1521_v41 }
0x191e   :  { %1245 = vmatpush.msrb.mxu3 %v1522_v43 }
0x1920   :  { %1246 = vmatpush.msrb.mxu3 %v1523_v44  ;;  %v224_v44 = vld [vmem:[%s1864_s0 + $0x70] sm:$0xff] }
0x1921   :  { %1374 = vmatmul.msk.f32.gmra.mxu2 %vm41_vm1, %v224_v44  ;;  %1344 = vmatmul.msk.f32.gmra.mxu0 %vm41_vm1, %v224_v44 }
0x1922   :  { %1247 = vmatpush.msrb.mxu3 %v1524_v45 }
0x199e   :  { %v1119_v9 = vpop.f32.mrf.mxu3  ;;  %v144_v2 = vpop.f32.mrf.mxu0 }
0x199f   :  { %v1122_v23 = vadd.f32 %v1119_v9, %v361_v5  ;;  %v210_v5 = vadd.f32 %v209_v22, %v144_v2 }
0x19a1   :  { %1497 = vtanh.f32 %v1122_v23  ;;  %v1398_v25 = vmul.f32 -1.442695, %v1122_v23 }
0x19a3   :  { %1499 = vpow2.f32 %v1398_v25 }
0x19a4   :  { %v326_v53 = vpop.f32.mrf.mxu2 }
0x19a5   :  { %v344_v54 = vadd.f32 %v326_v53, %v207_v52 }
0x19a7   :  { %v1498_v24 = vpop.eup %1497  ;;  %v362_v55 = vadd.f32 %v1803_v51, %v344_v54 }
0x19a8   :  { %1145 = vrot.lane.b32.xlu2 %v1498_v24, %s1527_s18 }
0x19a9   :  { %v1500_v26 = vpop.eup %1499 }
0x19aa   :  { %v1126_v14 = vadd.f32 1.0, %v1500_v26 }
0x19ac   :  { %1501 = vrcp.f32 %v1126_v14  ;;  %v1138_v32 = vand.u32 2147483648, %v1126_v14  ;;  %vm1132_vm5 = vweird.f32 %v1126_v14  ;;  %v1136_v33 = vand.u32 2147483647, %v1126_v14 }
0x19ae   :  { %v1139_v35 = vor.u32 1.1754944e-38, %v1138_v32  ;;  %vm1137_vm8 = vcmp.eq.f32.partialorder %v1136_v33, 8.507059e+37 }
0x19b2   :  { %v1502_v27 = vpop.eup %1501 }
0x19b3   :  { %v1128_v28 = vmul.f32 %v1502_v27, %v1126_v14  ;;  %vm1133_vm4 = vweird.f32 %v1502_v27 }
0x19b4   :  { %vm1134_vm7 = vmor %vm1132_vm5, %vm1133_vm4 }
0x19b5   :  { %v1129_v29 = vsub.f32 1.0, %v1128_v28 }
0x19b7   :  { %v1130_v30 = vmul.f32 %v1502_v27, %v1129_v29 }
0x19b9   :  { %v1131_v31 = vadd.f32 %v1502_v27, %v1130_v30 }
0x19bb   :  { %v1135_v34 = vsel %vm1134_vm7, %v1502_v27, %v1131_v31 }
0x19bc   :  { %v1140_v37 = vsel %vm1137_vm8, %v1139_v35, %v1135_v34 }
0x19bd   :  { %v1143_v39 = vmul.f32 %v1140_v37, %v1088_v12 }
0x1a02   :  { %v1146_v36 = vpop.permute.xlu2 %1145 }
0x1a03   :  { %v1148_v38 = vmul.f32 %v1146_v36, %v1140_v37 }
0x1a05   :  { %1150 = vrot.lane.b32.xlu0 %v1148_v38, %s1528_s19 }
0x1a77   :  { %v1151_v40 = vpop.permute.xlu0 %1150 }
0x1a78   :  { %v1153_v41 = vadd.f32 %v1151_v40, %v1143_v39 }
0x1a7a   :  { %1503 = vtanh.f32 %v1153_v41 }
0x1a80   :  { %v1504_v43 = vpop.eup %1503 }
0x1a81   :  { %1156 = vrot.lane.b32.xlu1 %v1504_v43, %s1527_s18 }
0x1af3   :  { %v1157_v45 = vpop.permute.xlu1 %1156 }
0x1af4   :  { %v1159_v46 = vmul.f32 %v1157_v45, %v1140_v37 }
0x1af6   :  { %v1160_v47 = vadd.f32 %v1159_v46, %v1095_v18  ;;  %1163 = vrot.lane.b32.xlu2 %v1159_v46, %s1528_s19  ;;  %v225_v18 = vld [vmem:[%s1864_s0 + $0x78] sm:$0xff] }
0x1af7   :  { %1375 = vmatmul.msk.f32.gmra.mxu2 %vm41_vm1, %v225_v18  ;;  %v1294_v46 = vld [vmem:[%s1866_s4 + $0x18] sm:$0xff] }
0x1af8   :  { %1316 = vmatpush.msrb.mxu0 %v1294_v46 }
0x1b50   :  { %v1164_v48 = vpop.permute.xlu2 %1163 }
0x1b51   :  { %1399 = vmatmul.msk.f32.vlgmr.msra.gmra.mxu3 %vm383_vm6, %v1164_v48  ;;  %v1292_v48 = vld [vmem:[%s1866_s4 + $0x8] sm:$0xff] }
0x1b7a   :  { %v329_v9 = vpop.f32.mrf.mxu2 }
0x1b7b   :  { %v345_v23 = vadd.f32 %v329_v9, %v210_v5 }
0x1b7d   :  { %v363_v24 = vadd.f32 %v1803_v51, %v345_v23 }
0x1bd4   :  { %v1184_v42 = vpop.f32.mrf.mxu3 }
0x1bd5   :  { %v1187_v56 = vadd.f32 %v1184_v42, %v362_v55  ;;  %v1408_v55 = vld [vmem:[%s1867_s5] ss:$0 sm:$0xff] }
0x1bd7   :  { %1505 = vtanh.f32 %v1187_v56  ;;  %v1400_v58 = vmul.f32 -1.442695, %v1187_v56 }
0x1bd9   :  { %1507 = vpow2.f32 %v1400_v58 }
0x1bdd   :  { %v1506_v57 = vpop.eup %1505 }
0x1bde   :  { %1210 = vrot.lane.b32.xlu0 %v1506_v57, %s1527_s18 }
0x1bdf   :  { %v1508_v59 = vpop.eup %1507 }
0x1be0   :  { %v1191_v60 = vadd.f32 1.0, %v1508_v59 }
0x1be2   :  { %1509 = vrcp.f32 %v1191_v60  ;;  %v1203_v4 = vand.u32 2147483648, %v1191_v60  ;;  %vm1197_vm10 = vweird.f32 %v1191_v60  ;;  %v1201_v6 = vand.u32 2147483647, %v1191_v60 }
0x1be4   :  { %v1204_v8 = vor.u32 1.1754944e-38, %v1203_v4  ;;  %vm1202_vm12 = vcmp.eq.f32.partialorder %v1201_v6, 8.507059e+37 }
0x1be8   :  { %v1510_v61 = vpop.eup %1509 }
0x1be9   :  { %v1193_v62 = vmul.f32 %v1510_v61, %v1191_v60  ;;  %vm1198_vm9 = vweird.f32 %v1510_v61 }
0x1bea   :  { %vm1199_vm11 = vmor %vm1197_vm10, %vm1198_vm9 }
0x1beb   :  { %v1194_v63 = vsub.f32 1.0, %v1193_v62 }
0x1bed   :  { %v1195_v1 = vmul.f32 %v1510_v61, %v1194_v63 }
0x1bef   :  { %v1196_v3 = vadd.f32 %v1510_v61, %v1195_v1 }
0x1bf1   :  { %v1200_v7 = vsel %vm1199_vm11, %v1510_v61, %v1196_v3 }
0x1bf2   :  { %v1205_v11 = vsel %vm1202_vm12, %v1204_v8, %v1200_v7 }
0x1bf3   :  { %v1208_v13 = vmul.f32 %v1205_v11, %v1153_v41 }
0x1c50   :  { %v1211_v10 = vpop.permute.xlu0 %1210 }
0x1c51   :  { %v1213_v12 = vmul.f32 %v1211_v10, %v1205_v11 }
0x1c53   :  { %1215 = vrot.lane.b32.xlu1 %v1213_v12, %s1528_s19 }
0x1cc5   :  { %v1216_v15 = vpop.permute.xlu1 %1215 }
0x1cc6   :  { %v1218_v16 = vadd.f32 %v1216_v15, %v1208_v13 }
0x1cc8   :  { %1511 = vtanh.f32 %v1218_v16 }
0x1cce   :  { %v1512_v17 = vpop.eup %1511 }
0x1ccf   :  { %1221 = vrot.lane.b32.xlu2 %v1512_v17, %s1527_s18 }
0x1d29   :  { %v1222_v19 = vpop.permute.xlu2 %1221 }
0x1d2a   :  { %v1224_v20 = vmul.f32 %v1222_v19, %v1205_v11 }
0x1d2c   :  { %v1225_v21 = vadd.f32 %v1224_v20, %v1160_v47  ;;  %1228 = vrot.lane.b32.xlu0 %v1224_v20, %s1528_s19  ;;  %v1293_v47 = vld [vmem:[%s1866_s4 + $0x10] sm:$0xff] }
0x1d2d   :  { %1317 = vmatpush.msrb.mxu0 %v1293_v47 }
0x1d2f   :  { %1318 = vmatpush.msrb.mxu0 %v1292_v48 }
0x1d31   :  { %1319 = vmatpush.msrb.mxu0 %v1291_v49 }
0x1d9e   :  { %v1229_v0 = vpop.permute.xlu0 %1228 }
0x1d9f   :  { %1401 = vmatmul.msk.f32.vlgmr.msrb.gmra.mxu3 %vm383_vm6, %v1229_v0 }
0x1e22   :  { %v1249_v25 = vpop.f32.mrf.mxu3 }
0x1e23   :  { %v1252_v26 = vadd.f32 %v1249_v25, %v363_v24 }
0x1e25   :  { %1513 = vtanh.f32 %v1252_v26  ;;  %v1402_v27 = vmul.f32 -1.442695, %v1252_v26 }
0x1e27   :  { %1515 = vpow2.f32 %v1402_v27 }
0x1e2b   :  { %v1514_v14 = vpop.eup %1513 }
0x1e2c   :  { %1275 = vrot.lane.b32.xlu1 %v1514_v14, %s1527_s18 }
0x1e2d   :  { %v1516_v28 = vpop.eup %1515 }
0x1e2e   :  { %v1256_v29 = vadd.f32 1.0, %v1516_v28 }
0x1e30   :  { %1517 = vrcp.f32 %v1256_v29  ;;  %v1268_v35 = vand.u32 2147483648, %v1256_v29  ;;  %vm1262_vm13 = vweird.f32 %v1256_v29  ;;  %v1266_v51 = vand.u32 2147483647, %v1256_v29 }
0x1e32   :  { %v1269_v37 = vor.u32 1.1754944e-38, %v1268_v35  ;;  %vm1267_vm15 = vcmp.eq.f32.partialorder %v1266_v51, 8.507059e+37 }
0x1e36   :  { %v1518_v30 = vpop.eup %1517 }
0x1e37   :  { %v1258_v31 = vmul.f32 %v1518_v30, %v1256_v29  ;;  %vm1263_vm1 = vweird.f32 %v1518_v30 }
0x1e38   :  { %vm1264_vm14 = vmor %vm1262_vm13, %vm1263_vm1 }
0x1e39   :  { %v1259_v32 = vsub.f32 1.0, %v1258_v31 }
0x1e3b   :  { %v1260_v33 = vmul.f32 %v1518_v30, %v1259_v32 }
0x1e3d   :  { %v1261_v34 = vadd.f32 %v1518_v30, %v1260_v33 }
0x1e3f   :  { %v1265_v36 = vsel %vm1264_vm14, %v1518_v30, %v1261_v34 }
0x1e40   :  { %v1270_v39 = vsel %vm1267_vm15, %v1269_v37, %v1265_v36 }
0x1e41   :  { %v1273_v41 = vmul.f32 %v1270_v39, %v1218_v16 }
0x1e9e   :  { %v1276_v38 = vpop.permute.xlu1 %1275 }
0x1e9f   :  { %v1278_v40 = vmul.f32 %v1276_v38, %v1270_v39 }
0x1ea1   :  { %1280 = vrot.lane.b32.xlu2 %v1278_v40, %s1528_s19 }
0x1efb   :  { %v1281_v43 = vpop.permute.xlu2 %1280 }
0x1efc   :  { %v1283_v44 = vadd.f32 %v1281_v43, %v1273_v41 }
0x1efe   :  { %1519 = vtanh.f32 %v1283_v44 }
0x1f04   :  { %v1520_v45 = vpop.eup %1519 }
0x1f05   :  { %1286 = vrot.lane.b32.xlu0 %v1520_v45, %s1527_s18 }
0x1f77   :  { %v1287_v50 = vpop.permute.xlu0 %1286 }
0x1f78   :  { %v1289_v52 = vmul.f32 %v1287_v50, %v1270_v39 }
0x1f7a   :  { %v1290_v53 = vadd.f32 %v1289_v52, %v1225_v21 }
0x1f7c   :  { %1300 = vrot.lane.b32.xlu1 %v1290_v53, %s1528_s19 }
0x1fee   :  { %v1301_v54 = vpop.permute.xlu1 %1300 }
0x1fef   :  { %1403 = vmatmul.msk.f32.vlgmr.msrb.gmra.mxu0 %vm383_vm6, %v1301_v54 }
0x206c   :  { %v1321_v42 = vpop.f32.mrf.mxu0 }
0x206d   :  { %v1322_v56 = vadd.f32 %v1408_v55, %v1321_v42 }
0x206f   :  { %1324 = vst [vmem:[%s1868_s6] sm:$0xff] %v1322_v56 }

</bundles_post_ra>
